<compile_context>
chip_gen: v6e
topology: v6e:2x2x1
jax: 0.10.0
libtpu: 0.0.40
codegen_flags: <defaults>
</compile_context>

<pallas_src>
import functools
import math

import jax
import jax.numpy as jnp
from jax.experimental import pallas as pl
from jax.experimental.pallas import tpu as pltpu


# ----------------------------------------------------------------------------
# Fused encoder kernel (single invocation, everything resident in VMEM)
# ----------------------------------------------------------------------------
def encoder_fused_kernel(
    x_ref, rs_ref, rr_ref, rrt_ref,
    w11_ref, b11_ref, w12_ref, b12_ref,          # mlp1
    w21_ref, b21_ref, w22_ref, b22_ref,          # mlp2 (full 2h-wide fc1)
    w31_ref, b31_ref, w32_ref, b32_ref,          # mlp3
    w41_ref, b41_ref, w42_ref, b42_ref,          # mlp4 (full 3h-wide fc1)
    wo_ref, bo_ref,                              # fc_out (lane-padded)
    o_ref,
    node_ref, xskip_ref, edges_ref,              # VMEM scratch
    *, batch, n_atoms, n_edges, n_hid,
):
    f32 = jnp.float32
    bf16 = jnp.bfloat16
    h = n_hid

    def mm(a, w):
        # bf16 MXU matmul, f32 accumulation.
        return jnp.dot(a.astype(bf16), w.astype(bf16), preferred_element_type=f32)

    def elu(v):
        # F.elu(alpha=1): safe form - never evaluates exp on the positive branch
        # values (avoids inf/NaN if this is ever differentiated through).
        return jnp.where(v > 0, v, jnp.exp(jnp.minimum(v, 0.0)) - 1.0)

    def batch_norm(y):
        # BatchNorm1d, training-mode batch stats over the flattened row axis,
        # gamma=1 / beta=0 (init_weights), biased variance, eps=1e-5. f32 math.
        mean = jnp.mean(y, axis=0, keepdims=True)
        d = y - mean
        var = jnp.mean(d * d, axis=0, keepdims=True)
        return d * jax.lax.rsqrt(var + 1e-5)

    def mlp_tail(pre1, w2_ref, b2_ref):
        # ELU(fc1) -> dropout(p=0)=identity -> fc2 -> ELU -> BN   (all f32)
        h1 = elu(pre1)
        y = elu(mm(h1, w2_ref[...]) + b2_ref[...])
        return batch_norm(y)

    rs = rs_ref[...]        # [E, N]  bf16 (0/1 exact)
    rr = rr_ref[...]        # [E, N]  bf16
    rrt = rrt_ref[...]      # [N, E]  bf16

    # --- mlp1 on node features -------------------------------------------
    h_node = mlp_tail(mm(x_ref[...], w11_ref[...]) + b11_ref[...],
                      w12_ref, b12_ref)                       # [B*N, h] f32
    node_ref[...] = h_node

    # --- node2edge #1: per-batch (E,N)@(N,h) gather-as-matmul (no B^2) ----
    # edges layout = [senders | receivers] assembled lane-wise in scratch.
    for b in range(batch):
        blk = node_ref[b * n_atoms:(b + 1) * n_atoms, :]      # [N, h]
        edges_ref[b * n_edges:(b + 1) * n_edges, 0:h] = mm(rs, blk)
        edges_ref[b * n_edges:(b + 1) * n_edges, h:2 * h] = mm(rr, blk)

    # --- mlp2: single wide-K (2h) fc1 matmul -------------------------------
    x_skip = mlp_tail(mm(edges_ref[:, 0:2 * h], w21_ref[...]) + b21_ref[...],
                      w22_ref, b22_ref)                       # [B*E, h] f32
    xskip_ref[...] = x_skip

    # --- edge2node: per-batch (N,E)@(E,h), divide by N ---------------------
    inv_n = 1.0 / float(n_atoms)
    for b in range(batch):
        eblk = xskip_ref[b * n_edges:(b + 1) * n_edges, :]    # [E, h]
        node_ref[b * n_atoms:(b + 1) * n_atoms, :] = mm(rrt, eblk) * inv_n

    # --- mlp3 on aggregated node features ----------------------------------
    h_node3 = mlp_tail(mm(node_ref[...], w31_ref[...]) + b31_ref[...],
                       w32_ref, b32_ref)                      # [B*N, h] f32
    node_ref[...] = h_node3

    # --- node2edge #2 + skip concat: [senders2 | receivers2 | x_skip] ------
    for b in range(batch):
        blk = node_ref[b * n_atoms:(b + 1) * n_atoms, :]
        edges_ref[b * n_edges:(b + 1) * n_edges, 0:h] = mm(rs, blk)
        edges_ref[b * n_edges:(b + 1) * n_edges, h:2 * h] = mm(rr, blk)
    edges_ref[:, 2 * h:3 * h] = xskip_ref[...]

    # --- mlp4 (single wide-K (3h) fc1) + fc_out -----------------------------
    h_edge = mlp_tail(mm(edges_ref[...], w41_ref[...]) + b41_ref[...],
                      w42_ref, b42_ref)                       # [B*E, h] f32
    # fc_out weights are lane-padded to 128 -> single unmasked lane-dense store.
    o_ref[...] = (mm(h_edge, wo_ref[...]) + bo_ref[...]).astype(o_ref.dtype)


# ----------------------------------------------------------------------------
# Wrapper
# ----------------------------------------------------------------------------
def mlp_encoder_forward(inputs, rel_rec, rel_send, params):
    """factor=True branch of MLPEncoder.forward (one fused pallas_call)."""
    B, N = inputs.shape[0], inputs.shape[1]
    E = rel_rec.shape[0]
    n_hid = params["mlp1"][2].shape[0]
    wo, bo = params["fc_out"]
    n_out = wo.shape[1]
    out_pad = max(128, ((n_out + 127) // 128) * 128)   # lane-dense output width

    bf = jnp.bfloat16
    f32 = jnp.float32

    # [B, N, T, D] -> [B*N, T*D]; single cast to bf16 (halves input DMA bytes).
    x2d = inputs.reshape(B * N, -1).astype(bf)

    # Tiny (E,N)/(N,E) incidence matrices (0/1 exact in bf16).
    # TODO(synk): these depend only on rel_rec/rel_send - precompute once
    # outside the per-call path when used inside a training loop.
    rs = rel_send.astype(bf)
    rr = rel_rec.astype(bf)
    rrt = rel_rec.T.astype(bf)

    def wb(w, b):
        return w.astype(bf), b.astype(f32).reshape(1, -1)

    w11, b11 = wb(*params["mlp1"][0:2]); w12, b12 = wb(*params["mlp1"][2:4])
    w21, b21 = wb(*params["mlp2"][0:2]); w22, b22 = wb(*params["mlp2"][2:4])
    w31, b31 = wb(*params["mlp3"][0:2]); w32, b32 = wb(*params["mlp3"][2:4])
    w41, b41 = wb(*params["mlp4"][0:2]); w42, b42 = wb(*params["mlp4"][2:4])

    # Zero-pad fc_out to a lane-friendly width (padded columns are exactly 0
    # and get sliced off below).
    wo_pad = jnp.zeros((n_hid, out_pad), f32).at[:, :n_out].set(wo).astype(bf)
    bo_pad = jnp.zeros((1, out_pad), f32).at[:, :n_out].set(bo.reshape(1, -1))

    args = [
        x2d, rs, rr, rrt,
        w11, b11, w12, b12,
        w21, b21, w22, b22,
        w31, b31, w32, b32,
        w41, b41, w42, b42,
        wo_pad, bo_pad,
    ]

    scratch_shapes = [
        pltpu.VMEM((B * N, n_hid), f32),       # node features (reused for mlp3)
        pltpu.VMEM((B * E, n_hid), f32),       # x_skip
        pltpu.VMEM((B * E, 3 * n_hid), f32),   # [senders|receivers|skip]
    ]

    # VMEM budget sized from the actual resident footprint (+ slack), so the
    # kernel neither spuriously OOMs under the 16/32 MiB scoped defaults nor
    # assumes v5e/v6e's 128 MiB headroom on v7x.
    footprint = sum(int(a.size) * a.dtype.itemsize for a in args)
    footprint += B * E * out_pad * 4                       # output
    footprint += (B * N + B * E + 3 * B * E) * n_hid * 4   # scratch
    vmem_limit = int(min(96 * 2 ** 20, max(8 * 2 ** 20, 4 * footprint)))

    kernel = functools.partial(
        encoder_fused_kernel, batch=B, n_atoms=N, n_edges=E, n_hid=n_hid)

    out2d = pl.pallas_call(
        kernel,
        out_shape=jax.ShapeDtypeStruct((B * E, out_pad), f32),
        in_specs=[pl.BlockSpec(memory_space=pltpu.MemorySpace.VMEM)] * len(args),
        out_specs=pl.BlockSpec(memory_space=pltpu.MemorySpace.VMEM),
        scratch_shapes=scratch_shapes,
        compiler_params=pltpu.CompilerParams(vmem_limit_bytes=vmem_limit),
    )(*args)

    return out2d[:, :n_out].reshape(B, E, n_out)


# ----------------------------------------------------------------------------
# Deterministic parameter initialization (xavier-normal weights, bias = 0.1)
# ----------------------------------------------------------------------------
def init_linear(key, n_in, n_out):
    std = math.sqrt(2.0 / (n_in + n_out))
    w = std * jax.random.normal(key, (n_in, n_out), dtype=jnp.float32)
    b = jnp.full((1, n_out), 0.1, dtype=jnp.float32)
    return w, b


def init_mlp(key, n_in, n_hid, n_out):
    k1, k2 = jax.random.split(key)
    w1, b1 = init_linear(k1, n_in, n_hid)
    w2, b2 = init_linear(k2, n_hid, n_out)
    return (w1, b1, w2, b2)


def init_encoder(key, n_in, n_hid, n_out):
    keys = jax.random.split(key, 5)
    return {
        "mlp1": init_mlp(keys[0], n_in, n_hid, n_hid),
        "mlp2": init_mlp(keys[1], 2 * n_hid, n_hid, n_hid),
        "mlp3": init_mlp(keys[2], n_hid, n_hid, n_hid),
        "mlp4": init_mlp(keys[3], 3 * n_hid, n_hid, n_hid),  # factor=True
        "fc_out": init_linear(keys[4], n_hid, n_out),
    }


# ----------------------------------------------------------------------------
if __name__ == "__main__":
    B, N_ATOMS, T, D = 2, 4, 8, 4        # inputs: [B, N, T, D] -> n_in = T*D = 32
    N_IN, N_HID, N_OUT = T * D, 32, 8

    key = jax.random.PRNGKey(0)
    k_in, k_par = jax.random.split(key)

    inputs = jax.random.normal(k_in, (B, N_ATOMS, T, D), dtype=jnp.float32)

    # Fully connected graph without self-loops: E = N*(N-1) one-hot rows.
    pairs = [(i, j) for i in range(N_ATOMS) for j in range(N_ATOMS) if i != j]
    rel_rec = jnp.array(
        [[1.0 if k == i else 0.0 for k in range(N_ATOMS)] for (i, j) in pairs],
        dtype=jnp.float32,
    )
    rel_send = jnp.array(
        [[1.0 if k == j else 0.0 for k in range(N_ATOMS)] for (i, j) in pairs],
        dtype=jnp.float32,
    )

    params = init_encoder(k_par, N_IN, N_HID, N_OUT)

    out = mlp_encoder_forward(inputs, rel_rec, rel_send, params)
    jax.block_until_ready(out)

    E = N_ATOMS * (N_ATOMS - 1)
    assert out.shape == (B, E, N_OUT), out.shape
    assert bool(jnp.all(jnp.isfinite(out)))
    print("KERNEL_OK")
</pallas_src>

<mosaic_0001>
module attributes {stable_mosaic.version = 11 : i64} {
  func.func @encoder_fused_kernel(%arg0: memref<8x32xbf16, #tpu.memory_space<vmem>>, %arg1: memref<12x4xbf16, #tpu.memory_space<vmem>>, %arg2: memref<12x4xbf16, #tpu.memory_space<vmem>>, %arg3: memref<4x12xbf16, #tpu.memory_space<vmem>>, %arg4: memref<32x32xbf16, #tpu.memory_space<vmem>>, %arg5: memref<1x32xf32, #tpu.memory_space<vmem>>, %arg6: memref<32x32xbf16, #tpu.memory_space<vmem>>, %arg7: memref<1x32xf32, #tpu.memory_space<vmem>>, %arg8: memref<64x32xbf16, #tpu.memory_space<vmem>>, %arg9: memref<1x32xf32, #tpu.memory_space<vmem>>, %arg10: memref<32x32xbf16, #tpu.memory_space<vmem>>, %arg11: memref<1x32xf32, #tpu.memory_space<vmem>>, %arg12: memref<32x32xbf16, #tpu.memory_space<vmem>>, %arg13: memref<1x32xf32, #tpu.memory_space<vmem>>, %arg14: memref<32x32xbf16, #tpu.memory_space<vmem>>, %arg15: memref<1x32xf32, #tpu.memory_space<vmem>>, %arg16: memref<96x32xbf16, #tpu.memory_space<vmem>>, %arg17: memref<1x32xf32, #tpu.memory_space<vmem>>, %arg18: memref<32x32xbf16, #tpu.memory_space<vmem>>, %arg19: memref<1x32xf32, #tpu.memory_space<vmem>>, %arg20: memref<32x128xbf16, #tpu.memory_space<vmem>>, %arg21: memref<1x128xf32, #tpu.memory_space<vmem>>, %arg22: memref<24x128xf32, #tpu.memory_space<vmem>>, %arg23: memref<8x32xf32, #tpu.memory_space<vmem>>, %arg24: memref<24x32xf32, #tpu.memory_space<vmem>>, %arg25: memref<24x96xf32, #tpu.memory_space<vmem>>) attributes {dimension_semantics = [], scalar_prefetch = 0 : i64, scratch_operands = 3 : i64, tpu.core_type = #tpu.core_type<tc>} {
    %c0 = arith.constant 0 : index
    %c0_0 = arith.constant 0 : index
    %0 = vector.load %arg1[%c0, %c0_0] : memref<12x4xbf16, #tpu.memory_space<vmem>>, vector<12x4xbf16>
    %c0_1 = arith.constant 0 : index
    %c0_2 = arith.constant 0 : index
    %1 = vector.load %arg2[%c0_1, %c0_2] : memref<12x4xbf16, #tpu.memory_space<vmem>>, vector<12x4xbf16>
    %c0_3 = arith.constant 0 : index
    %c0_4 = arith.constant 0 : index
    %2 = vector.load %arg3[%c0_3, %c0_4] : memref<4x12xbf16, #tpu.memory_space<vmem>>, vector<4x12xbf16>
    %c0_5 = arith.constant 0 : index
    %c0_6 = arith.constant 0 : index
    %3 = vector.load %arg0[%c0_5, %c0_6] : memref<8x32xbf16, #tpu.memory_space<vmem>>, vector<8x32xbf16>
    %c0_7 = arith.constant 0 : index
    %c0_8 = arith.constant 0 : index
    %4 = vector.load %arg4[%c0_7, %c0_8] : memref<32x32xbf16, #tpu.memory_space<vmem>>, vector<32x32xbf16>
    %cst = arith.constant dense<0.000000e+00> : vector<8x32xf32>
    %5 = tpu.matmul %3, %4, %cst {dimension_numbers = #tpu.dot_dimension_numbers<[1], [0], [0], [1], [0, 0, 1, 1], [], []>} : vector<8x32xbf16>, vector<32x32xbf16>, vector<8x32xf32> -> vector<8x32xf32>
    %c0_9 = arith.constant 0 : index
    %c0_10 = arith.constant 0 : index
    %6 = vector.load %arg5[%c0_9, %c0_10] : memref<1x32xf32, #tpu.memory_space<vmem>>, vector<1x32xf32>
    %7 = vector.broadcast %6 : vector<1x32xf32> to vector<8x32xf32>
    %8 = arith.addf %5, %7 : vector<8x32xf32>
    %cst_11 = arith.constant 0.000000e+00 : f32
    %9 = vector.broadcast %cst_11 : f32 to vector<8x32xf32>
    %10 = arith.cmpf ogt, %8, %9 : vector<8x32xf32>
    %cst_12 = arith.constant 0.000000e+00 : f32
    %11 = vector.broadcast %cst_12 : f32 to vector<8x32xf32>
    %12 = arith.minimumf %8, %11 : vector<8x32xf32>
    %13 = math.exp %12 : vector<8x32xf32>
    %cst_13 = arith.constant 1.000000e+00 : f32
    %14 = vector.broadcast %cst_13 : f32 to vector<8x32xf32>
    %15 = arith.subf %13, %14 : vector<8x32xf32>
    %16 = arith.select %10, %8, %15 : vector<8x32xi1>, vector<8x32xf32>
    %c0_14 = arith.constant 0 : index
    %c0_15 = arith.constant 0 : index
    %17 = vector.load %arg6[%c0_14, %c0_15] : memref<32x32xbf16, #tpu.memory_space<vmem>>, vector<32x32xbf16>
    %18 = arith.truncf %16 : vector<8x32xf32> to vector<8x32xbf16>
    %cst_16 = arith.constant dense<0.000000e+00> : vector<8x32xf32>
    %19 = tpu.matmul %18, %17, %cst_16 {dimension_numbers = #tpu.dot_dimension_numbers<[1], [0], [0], [1], [0, 0, 1, 1], [], []>} : vector<8x32xbf16>, vector<32x32xbf16>, vector<8x32xf32> -> vector<8x32xf32>
    %c0_17 = arith.constant 0 : index
    %c0_18 = arith.constant 0 : index
    %20 = vector.load %arg7[%c0_17, %c0_18] : memref<1x32xf32, #tpu.memory_space<vmem>>, vector<1x32xf32>
    %21 = vector.broadcast %20 : vector<1x32xf32> to vector<8x32xf32>
    %22 = arith.addf %19, %21 : vector<8x32xf32>
    %cst_19 = arith.constant 0.000000e+00 : f32
    %23 = vector.broadcast %cst_19 : f32 to vector<8x32xf32>
    %24 = arith.cmpf ogt, %22, %23 : vector<8x32xf32>
    %cst_20 = arith.constant 0.000000e+00 : f32
    %25 = vector.broadcast %cst_20 : f32 to vector<8x32xf32>
    %26 = arith.minimumf %22, %25 : vector<8x32xf32>
    %27 = math.exp %26 : vector<8x32xf32>
    %cst_21 = arith.constant 1.000000e+00 : f32
    %28 = vector.broadcast %cst_21 : f32 to vector<8x32xf32>
    %29 = arith.subf %27, %28 : vector<8x32xf32>
    %30 = arith.select %24, %22, %29 : vector<8x32xi1>, vector<8x32xf32>
    %cst_22 = arith.constant dense<0.000000e+00> : vector<32xf32>
    %31 = vector.multi_reduction <add>, %30, %cst_22 [0] : vector<8x32xf32> to vector<32xf32>
    %32 = vector.shape_cast %31 : vector<32xf32> to vector<1x32xf32>
    %cst_23 = arith.constant 8.000000e+00 : f32
    %33 = vector.broadcast %cst_23 : f32 to vector<1x32xf32>
    %34 = arith.divf %32, %33 : vector<1x32xf32>
    %35 = vector.broadcast %34 : vector<1x32xf32> to vector<8x32xf32>
    %36 = arith.subf %30, %35 : vector<8x32xf32>
    %37 = arith.mulf %36, %36 : vector<8x32xf32>
    %cst_24 = arith.constant dense<0.000000e+00> : vector<32xf32>
    %38 = vector.multi_reduction <add>, %37, %cst_24 [0] : vector<8x32xf32> to vector<32xf32>
    %39 = vector.shape_cast %38 : vector<32xf32> to vector<1x32xf32>
    %cst_25 = arith.constant 8.000000e+00 : f32
    %40 = vector.broadcast %cst_25 : f32 to vector<1x32xf32>
    %41 = arith.divf %39, %40 : vector<1x32xf32>
    %cst_26 = arith.constant 9.99999974E-6 : f32
    %42 = vector.broadcast %cst_26 : f32 to vector<1x32xf32>
    %43 = arith.addf %41, %42 : vector<1x32xf32>
    %44 = math.rsqrt %43 : vector<1x32xf32>
    %45 = vector.broadcast %44 : vector<1x32xf32> to vector<8x32xf32>
    %46 = arith.mulf %36, %45 : vector<8x32xf32>
    %c0_27 = arith.constant 0 : index
    %c0_28 = arith.constant 0 : index
    %47 = vector.load %arg23[%c0_27, %c0_28] : memref<8x32xf32, #tpu.memory_space<vmem>>, vector<8x32xf32>
    tpu.vector_store %arg23[%c0_27, %c0_28], %46 {strides = array<i32>} : memref<8x32xf32, #tpu.memory_space<vmem>>, vector<8x32xf32>,
    %c0_29 = arith.constant 0 : index
    %c0_30 = arith.constant 0 : index
    %48 = vector.load %arg23[%c0_29, %c0_30] : memref<8x32xf32, #tpu.memory_space<vmem>>, vector<4x32xf32>
    %49 = arith.truncf %48 : vector<4x32xf32> to vector<4x32xbf16>
    %cst_31 = arith.constant dense<0.000000e+00> : vector<12x32xf32>
    %50 = tpu.matmul %0, %49, %cst_31 {dimension_numbers = #tpu.dot_dimension_numbers<[1], [0], [0], [1], [0, 0, 1, 1], [], []>} : vector<12x4xbf16>, vector<4x32xbf16>, vector<12x32xf32> -> vector<12x32xf32>
    %c0_32 = arith.constant 0 : index
    %c0_33 = arith.constant 0 : index
    %51 = vector.load %arg25[%c0_32, %c0_33] : memref<24x96xf32, #tpu.memory_space<vmem>>, vector<12x32xf32>
    tpu.vector_store %arg25[%c0_32, %c0_33], %50 {strides = array<i32>} : memref<24x96xf32, #tpu.memory_space<vmem>>, vector<12x32xf32>,
    %52 = arith.truncf %48 : vector<4x32xf32> to vector<4x32xbf16>
    %cst_34 = arith.constant dense<0.000000e+00> : vector<12x32xf32>
    %53 = tpu.matmul %1, %52, %cst_34 {dimension_numbers = #tpu.dot_dimension_numbers<[1], [0], [0], [1], [0, 0, 1, 1], [], []>} : vector<12x4xbf16>, vector<4x32xbf16>, vector<12x32xf32> -> vector<12x32xf32>
    %c0_35 = arith.constant 0 : index
    %c32 = arith.constant 32 : index
    %54 = vector.load %arg25[%c0_35, %c32] : memref<24x96xf32, #tpu.memory_space<vmem>>, vector<12x32xf32>
    tpu.vector_store %arg25[%c0_35, %c32], %53 {strides = array<i32>} : memref<24x96xf32, #tpu.memory_space<vmem>>, vector<12x32xf32>,
    %c4 = arith.constant 4 : index
    %c0_36 = arith.constant 0 : index
    %55 = vector.load %arg23[%c4, %c0_36] : memref<8x32xf32, #tpu.memory_space<vmem>>, vector<4x32xf32>
    %56 = arith.truncf %55 : vector<4x32xf32> to vector<4x32xbf16>
    %cst_37 = arith.constant dense<0.000000e+00> : vector<12x32xf32>
    %57 = tpu.matmul %0, %56, %cst_37 {dimension_numbers = #tpu.dot_dimension_numbers<[1], [0], [0], [1], [0, 0, 1, 1], [], []>} : vector<12x4xbf16>, vector<4x32xbf16>, vector<12x32xf32> -> vector<12x32xf32>
    %c12 = arith.constant 12 : index
    %c0_38 = arith.constant 0 : index
    %58 = vector.load %arg25[%c12, %c0_38] : memref<24x96xf32, #tpu.memory_space<vmem>>, vector<12x32xf32>
    tpu.vector_store %arg25[%c12, %c0_38], %57 {strides = array<i32>} : memref<24x96xf32, #tpu.memory_space<vmem>>, vector<12x32xf32>,
    %59 = arith.truncf %55 : vector<4x32xf32> to vector<4x32xbf16>
    %cst_39 = arith.constant dense<0.000000e+00> : vector<12x32xf32>
    %60 = tpu.matmul %1, %59, %cst_39 {dimension_numbers = #tpu.dot_dimension_numbers<[1], [0], [0], [1], [0, 0, 1, 1], [], []>} : vector<12x4xbf16>, vector<4x32xbf16>, vector<12x32xf32> -> vector<12x32xf32>
    %c12_40 = arith.constant 12 : index
    %c32_41 = arith.constant 32 : index
    %61 = vector.load %arg25[%c12_40, %c32_41] : memref<24x96xf32, #tpu.memory_space<vmem>>, vector<12x32xf32>
    tpu.vector_store %arg25[%c12_40, %c32_41], %60 {strides = array<i32>} : memref<24x96xf32, #tpu.memory_space<vmem>>, vector<12x32xf32>,
    %c0_42 = arith.constant 0 : index
    %c0_43 = arith.constant 0 : index
    %62 = vector.load %arg25[%c0_42, %c0_43] : memref<24x96xf32, #tpu.memory_space<vmem>>, vector<24x64xf32>
    %c0_44 = arith.constant 0 : index
    %c0_45 = arith.constant 0 : index
    %63 = vector.load %arg8[%c0_44, %c0_45] : memref<64x32xbf16, #tpu.memory_space<vmem>>, vector<64x32xbf16>
    %64 = arith.truncf %62 : vector<24x64xf32> to vector<24x64xbf16>
    %cst_46 = arith.constant dense<0.000000e+00> : vector<24x32xf32>
    %65 = tpu.matmul %64, %63, %cst_46 {dimension_numbers = #tpu.dot_dimension_numbers<[1], [0], [0], [1], [0, 0, 1, 1], [], []>} : vector<24x64xbf16>, vector<64x32xbf16>, vector<24x32xf32> -> vector<24x32xf32>
    %c0_47 = arith.constant 0 : index
    %c0_48 = arith.constant 0 : index
    %66 = vector.load %arg9[%c0_47, %c0_48] : memref<1x32xf32, #tpu.memory_space<vmem>>, vector<1x32xf32>
    %67 = vector.broadcast %66 : vector<1x32xf32> to vector<24x32xf32>
    %68 = arith.addf %65, %67 : vector<24x32xf32>
    %cst_49 = arith.constant 0.000000e+00 : f32
    %69 = vector.broadcast %cst_49 : f32 to vector<24x32xf32>
    %70 = arith.cmpf ogt, %68, %69 : vector<24x32xf32>
    %cst_50 = arith.constant 0.000000e+00 : f32
    %71 = vector.broadcast %cst_50 : f32 to vector<24x32xf32>
    %72 = arith.minimumf %68, %71 : vector<24x32xf32>
    %73 = math.exp %72 : vector<24x32xf32>
    %cst_51 = arith.constant 1.000000e+00 : f32
    %74 = vector.broadcast %cst_51 : f32 to vector<24x32xf32>
    %75 = arith.subf %73, %74 : vector<24x32xf32>
    %76 = arith.select %70, %68, %75 : vector<24x32xi1>, vector<24x32xf32>
    %c0_52 = arith.constant 0 : index
    %c0_53 = arith.constant 0 : index
    %77 = vector.load %arg10[%c0_52, %c0_53] : memref<32x32xbf16, #tpu.memory_space<vmem>>, vector<32x32xbf16>
    %78 = arith.truncf %76 : vector<24x32xf32> to vector<24x32xbf16>
    %cst_54 = arith.constant dense<0.000000e+00> : vector<24x32xf32>
    %79 = tpu.matmul %78, %77, %cst_54 {dimension_numbers = #tpu.dot_dimension_numbers<[1], [0], [0], [1], [0, 0, 1, 1], [], []>} : vector<24x32xbf16>, vector<32x32xbf16>, vector<24x32xf32> -> vector<24x32xf32>
    %c0_55 = arith.constant 0 : index
    %c0_56 = arith.constant 0 : index
    %80 = vector.load %arg11[%c0_55, %c0_56] : memref<1x32xf32, #tpu.memory_space<vmem>>, vector<1x32xf32>
    %81 = vector.broadcast %80 : vector<1x32xf32> to vector<24x32xf32>
    %82 = arith.addf %79, %81 : vector<24x32xf32>
    %cst_57 = arith.constant 0.000000e+00 : f32
    %83 = vector.broadcast %cst_57 : f32 to vector<24x32xf32>
    %84 = arith.cmpf ogt, %82, %83 : vector<24x32xf32>
    %cst_58 = arith.constant 0.000000e+00 : f32
    %85 = vector.broadcast %cst_58 : f32 to vector<24x32xf32>
    %86 = arith.minimumf %82, %85 : vector<24x32xf32>
    %87 = math.exp %86 : vector<24x32xf32>
    %cst_59 = arith.constant 1.000000e+00 : f32
    %88 = vector.broadcast %cst_59 : f32 to vector<24x32xf32>
    %89 = arith.subf %87, %88 : vector<24x32xf32>
    %90 = arith.select %84, %82, %89 : vector<24x32xi1>, vector<24x32xf32>
    %cst_60 = arith.constant dense<0.000000e+00> : vector<32xf32>
    %91 = vector.multi_reduction <add>, %90, %cst_60 [0] : vector<24x32xf32> to vector<32xf32>
    %92 = vector.shape_cast %91 : vector<32xf32> to vector<1x32xf32>
    %cst_61 = arith.constant 2.400000e+01 : f32
    %93 = vector.broadcast %cst_61 : f32 to vector<1x32xf32>
    %94 = arith.divf %92, %93 : vector<1x32xf32>
    %95 = vector.broadcast %94 : vector<1x32xf32> to vector<24x32xf32>
    %96 = arith.subf %90, %95 : vector<24x32xf32>
    %97 = arith.mulf %96, %96 : vector<24x32xf32>
    %cst_62 = arith.constant dense<0.000000e+00> : vector<32xf32>
    %98 = vector.multi_reduction <add>, %97, %cst_62 [0] : vector<24x32xf32> to vector<32xf32>
    %99 = vector.shape_cast %98 : vector<32xf32> to vector<1x32xf32>
    %cst_63 = arith.constant 2.400000e+01 : f32
    %100 = vector.broadcast %cst_63 : f32 to vector<1x32xf32>
    %101 = arith.divf %99, %100 : vector<1x32xf32>
    %cst_64 = arith.constant 9.99999974E-6 : f32
    %102 = vector.broadcast %cst_64 : f32 to vector<1x32xf32>
    %103 = arith.addf %101, %102 : vector<1x32xf32>
    %104 = math.rsqrt %103 : vector<1x32xf32>
    %105 = vector.broadcast %104 : vector<1x32xf32> to vector<24x32xf32>
    %106 = arith.mulf %96, %105 : vector<24x32xf32>
    %c0_65 = arith.constant 0 : index
    %c0_66 = arith.constant 0 : index
    %107 = vector.load %arg24[%c0_65, %c0_66] : memref<24x32xf32, #tpu.memory_space<vmem>>, vector<24x32xf32>
    tpu.vector_store %arg24[%c0_65, %c0_66], %106 {strides = array<i32>} : memref<24x32xf32, #tpu.memory_space<vmem>>, vector<24x32xf32>,
    %c0_67 = arith.constant 0 : index
    %c0_68 = arith.constant 0 : index
    %108 = vector.load %arg24[%c0_67, %c0_68] : memref<24x32xf32, #tpu.memory_space<vmem>>, vector<12x32xf32>
    %109 = arith.truncf %108 : vector<12x32xf32> to vector<12x32xbf16>
    %cst_69 = arith.constant dense<0.000000e+00> : vector<4x32xf32>
    %110 = tpu.matmul %2, %109, %cst_69 {dimension_numbers = #tpu.dot_dimension_numbers<[1], [0], [0], [1], [0, 0, 1, 1], [], []>} : vector<4x12xbf16>, vector<12x32xbf16>, vector<4x32xf32> -> vector<4x32xf32>
    %cst_70 = arith.constant 2.500000e-01 : f32
    %111 = vector.broadcast %cst_70 : f32 to vector<4x32xf32>
    %112 = arith.mulf %110, %111 : vector<4x32xf32>
    %c0_71 = arith.constant 0 : index
    %c0_72 = arith.constant 0 : index
    %113 = vector.load %arg23[%c0_71, %c0_72] : memref<8x32xf32, #tpu.memory_space<vmem>>, vector<4x32xf32>
    tpu.vector_store %arg23[%c0_71, %c0_72], %112 {strides = array<i32>} : memref<8x32xf32, #tpu.memory_space<vmem>>, vector<4x32xf32>,
    %c12_73 = arith.constant 12 : index
    %c0_74 = arith.constant 0 : index
    %114 = vector.load %arg24[%c12_73, %c0_74] : memref<24x32xf32, #tpu.memory_space<vmem>>, vector<12x32xf32>
    %115 = arith.truncf %114 : vector<12x32xf32> to vector<12x32xbf16>
    %cst_75 = arith.constant dense<0.000000e+00> : vector<4x32xf32>
    %116 = tpu.matmul %2, %115, %cst_75 {dimension_numbers = #tpu.dot_dimension_numbers<[1], [0], [0], [1], [0, 0, 1, 1], [], []>} : vector<4x12xbf16>, vector<12x32xbf16>, vector<4x32xf32> -> vector<4x32xf32>
    %cst_76 = arith.constant 2.500000e-01 : f32
    %117 = vector.broadcast %cst_76 : f32 to vector<4x32xf32>
    %118 = arith.mulf %116, %117 : vector<4x32xf32>
    %c4_77 = arith.constant 4 : index
    %c0_78 = arith.constant 0 : index
    %119 = vector.load %arg23[%c4_77, %c0_78] : memref<8x32xf32, #tpu.memory_space<vmem>>, vector<4x32xf32>
    tpu.vector_store %arg23[%c4_77, %c0_78], %118 {strides = array<i32>} : memref<8x32xf32, #tpu.memory_space<vmem>>, vector<4x32xf32>,
    %c0_79 = arith.constant 0 : index
    %c0_80 = arith.constant 0 : index
    %120 = vector.load %arg23[%c0_79, %c0_80] : memref<8x32xf32, #tpu.memory_space<vmem>>, vector<8x32xf32>
    %c0_81 = arith.constant 0 : index
    %c0_82 = arith.constant 0 : index
    %121 = vector.load %arg12[%c0_81, %c0_82] : memref<32x32xbf16, #tpu.memory_space<vmem>>, vector<32x32xbf16>
    %122 = arith.truncf %120 : vector<8x32xf32> to vector<8x32xbf16>
    %cst_83 = arith.constant dense<0.000000e+00> : vector<8x32xf32>
    %123 = tpu.matmul %122, %121, %cst_83 {dimension_numbers = #tpu.dot_dimension_numbers<[1], [0], [0], [1], [0, 0, 1, 1], [], []>} : vector<8x32xbf16>, vector<32x32xbf16>, vector<8x32xf32> -> vector<8x32xf32>
    %c0_84 = arith.constant 0 : index
    %c0_85 = arith.constant 0 : index
    %124 = vector.load %arg13[%c0_84, %c0_85] : memref<1x32xf32, #tpu.memory_space<vmem>>, vector<1x32xf32>
    %125 = vector.broadcast %124 : vector<1x32xf32> to vector<8x32xf32>
    %126 = arith.addf %123, %125 : vector<8x32xf32>
    %cst_86 = arith.constant 0.000000e+00 : f32
    %127 = vector.broadcast %cst_86 : f32 to vector<8x32xf32>
    %128 = arith.cmpf ogt, %126, %127 : vector<8x32xf32>
    %cst_87 = arith.constant 0.000000e+00 : f32
    %129 = vector.broadcast %cst_87 : f32 to vector<8x32xf32>
    %130 = arith.minimumf %126, %129 : vector<8x32xf32>
    %131 = math.exp %130 : vector<8x32xf32>
    %cst_88 = arith.constant 1.000000e+00 : f32
    %132 = vector.broadcast %cst_88 : f32 to vector<8x32xf32>
    %133 = arith.subf %131, %132 : vector<8x32xf32>
    %134 = arith.select %128, %126, %133 : vector<8x32xi1>, vector<8x32xf32>
    %c0_89 = arith.constant 0 : index
    %c0_90 = arith.constant 0 : index
    %135 = vector.load %arg14[%c0_89, %c0_90] : memref<32x32xbf16, #tpu.memory_space<vmem>>, vector<32x32xbf16>
    %136 = arith.truncf %134 : vector<8x32xf32> to vector<8x32xbf16>
    %cst_91 = arith.constant dense<0.000000e+00> : vector<8x32xf32>
    %137 = tpu.matmul %136, %135, %cst_91 {dimension_numbers = #tpu.dot_dimension_numbers<[1], [0], [0], [1], [0, 0, 1, 1], [], []>} : vector<8x32xbf16>, vector<32x32xbf16>, vector<8x32xf32> -> vector<8x32xf32>
    %c0_92 = arith.constant 0 : index
    %c0_93 = arith.constant 0 : index
    %138 = vector.load %arg15[%c0_92, %c0_93] : memref<1x32xf32, #tpu.memory_space<vmem>>, vector<1x32xf32>
    %139 = vector.broadcast %138 : vector<1x32xf32> to vector<8x32xf32>
    %140 = arith.addf %137, %139 : vector<8x32xf32>
    %cst_94 = arith.constant 0.000000e+00 : f32
    %141 = vector.broadcast %cst_94 : f32 to vector<8x32xf32>
    %142 = arith.cmpf ogt, %140, %141 : vector<8x32xf32>
    %cst_95 = arith.constant 0.000000e+00 : f32
    %143 = vector.broadcast %cst_95 : f32 to vector<8x32xf32>
    %144 = arith.minimumf %140, %143 : vector<8x32xf32>
    %145 = math.exp %144 : vector<8x32xf32>
    %cst_96 = arith.constant 1.000000e+00 : f32
    %146 = vector.broadcast %cst_96 : f32 to vector<8x32xf32>
    %147 = arith.subf %145, %146 : vector<8x32xf32>
    %148 = arith.select %142, %140, %147 : vector<8x32xi1>, vector<8x32xf32>
    %cst_97 = arith.constant dense<0.000000e+00> : vector<32xf32>
    %149 = vector.multi_reduction <add>, %148, %cst_97 [0] : vector<8x32xf32> to vector<32xf32>
    %150 = vector.shape_cast %149 : vector<32xf32> to vector<1x32xf32>
    %cst_98 = arith.constant 8.000000e+00 : f32
    %151 = vector.broadcast %cst_98 : f32 to vector<1x32xf32>
    %152 = arith.divf %150, %151 : vector<1x32xf32>
    %153 = vector.broadcast %152 : vector<1x32xf32> to vector<8x32xf32>
    %154 = arith.subf %148, %153 : vector<8x32xf32>
    %155 = arith.mulf %154, %154 : vector<8x32xf32>
    %cst_99 = arith.constant dense<0.000000e+00> : vector<32xf32>
    %156 = vector.multi_reduction <add>, %155, %cst_99 [0] : vector<8x32xf32> to vector<32xf32>
    %157 = vector.shape_cast %156 : vector<32xf32> to vector<1x32xf32>
    %cst_100 = arith.constant 8.000000e+00 : f32
    %158 = vector.broadcast %cst_100 : f32 to vector<1x32xf32>
    %159 = arith.divf %157, %158 : vector<1x32xf32>
    %cst_101 = arith.constant 9.99999974E-6 : f32
    %160 = vector.broadcast %cst_101 : f32 to vector<1x32xf32>
    %161 = arith.addf %159, %160 : vector<1x32xf32>
    %162 = math.rsqrt %161 : vector<1x32xf32>
    %163 = vector.broadcast %162 : vector<1x32xf32> to vector<8x32xf32>
    %164 = arith.mulf %154, %163 : vector<8x32xf32>
    %c0_102 = arith.constant 0 : index
    %c0_103 = arith.constant 0 : index
    %165 = vector.load %arg23[%c0_102, %c0_103] : memref<8x32xf32, #tpu.memory_space<vmem>>, vector<8x32xf32>
    tpu.vector_store %arg23[%c0_102, %c0_103], %164 {strides = array<i32>} : memref<8x32xf32, #tpu.memory_space<vmem>>, vector<8x32xf32>,
    %c0_104 = arith.constant 0 : index
    %c0_105 = arith.constant 0 : index
    %166 = vector.load %arg23[%c0_104, %c0_105] : memref<8x32xf32, #tpu.memory_space<vmem>>, vector<4x32xf32>
    %167 = arith.truncf %166 : vector<4x32xf32> to vector<4x32xbf16>
    %cst_106 = arith.constant dense<0.000000e+00> : vector<12x32xf32>
    %168 = tpu.matmul %0, %167, %cst_106 {dimension_numbers = #tpu.dot_dimension_numbers<[1], [0], [0], [1], [0, 0, 1, 1], [], []>} : vector<12x4xbf16>, vector<4x32xbf16>, vector<12x32xf32> -> vector<12x32xf32>
    %c0_107 = arith.constant 0 : index
    %c0_108 = arith.constant 0 : index
    %169 = vector.load %arg25[%c0_107, %c0_108] : memref<24x96xf32, #tpu.memory_space<vmem>>, vector<12x32xf32>
    tpu.vector_store %arg25[%c0_107, %c0_108], %168 {strides = array<i32>} : memref<24x96xf32, #tpu.memory_space<vmem>>, vector<12x32xf32>,
    %170 = arith.truncf %166 : vector<4x32xf32> to vector<4x32xbf16>
    %cst_109 = arith.constant dense<0.000000e+00> : vector<12x32xf32>
    %171 = tpu.matmul %1, %170, %cst_109 {dimension_numbers = #tpu.dot_dimension_numbers<[1], [0], [0], [1], [0, 0, 1, 1], [], []>} : vector<12x4xbf16>, vector<4x32xbf16>, vector<12x32xf32> -> vector<12x32xf32>
    %c0_110 = arith.constant 0 : index
    %c32_111 = arith.constant 32 : index
    %172 = vector.load %arg25[%c0_110, %c32_111] : memref<24x96xf32, #tpu.memory_space<vmem>>, vector<12x32xf32>
    tpu.vector_store %arg25[%c0_110, %c32_111], %171 {strides = array<i32>} : memref<24x96xf32, #tpu.memory_space<vmem>>, vector<12x32xf32>,
    %c4_112 = arith.constant 4 : index
    %c0_113 = arith.constant 0 : index
    %173 = vector.load %arg23[%c4_112, %c0_113] : memref<8x32xf32, #tpu.memory_space<vmem>>, vector<4x32xf32>
    %174 = arith.truncf %173 : vector<4x32xf32> to vector<4x32xbf16>
    %cst_114 = arith.constant dense<0.000000e+00> : vector<12x32xf32>
    %175 = tpu.matmul %0, %174, %cst_114 {dimension_numbers = #tpu.dot_dimension_numbers<[1], [0], [0], [1], [0, 0, 1, 1], [], []>} : vector<12x4xbf16>, vector<4x32xbf16>, vector<12x32xf32> -> vector<12x32xf32>
    %c12_115 = arith.constant 12 : index
    %c0_116 = arith.constant 0 : index
    %176 = vector.load %arg25[%c12_115, %c0_116] : memref<24x96xf32, #tpu.memory_space<vmem>>, vector<12x32xf32>
    tpu.vector_store %arg25[%c12_115, %c0_116], %175 {strides = array<i32>} : memref<24x96xf32, #tpu.memory_space<vmem>>, vector<12x32xf32>,
    %177 = arith.truncf %173 : vector<4x32xf32> to vector<4x32xbf16>
    %cst_117 = arith.constant dense<0.000000e+00> : vector<12x32xf32>
    %178 = tpu.matmul %1, %177, %cst_117 {dimension_numbers = #tpu.dot_dimension_numbers<[1], [0], [0], [1], [0, 0, 1, 1], [], []>} : vector<12x4xbf16>, vector<4x32xbf16>, vector<12x32xf32> -> vector<12x32xf32>
    %c12_118 = arith.constant 12 : index
    %c32_119 = arith.constant 32 : index
    %179 = vector.load %arg25[%c12_118, %c32_119] : memref<24x96xf32, #tpu.memory_space<vmem>>, vector<12x32xf32>
    tpu.vector_store %arg25[%c12_118, %c32_119], %178 {strides = array<i32>} : memref<24x96xf32, #tpu.memory_space<vmem>>, vector<12x32xf32>,
    %c0_120 = arith.constant 0 : index
    %c0_121 = arith.constant 0 : index
    %180 = vector.load %arg24[%c0_120, %c0_121] : memref<24x32xf32, #tpu.memory_space<vmem>>, vector<24x32xf32>
    %c0_122 = arith.constant 0 : index
    %c64 = arith.constant 64 : index
    %181 = vector.load %arg25[%c0_122, %c64] : memref<24x96xf32, #tpu.memory_space<vmem>>, vector<24x32xf32>
    tpu.vector_store %arg25[%c0_122, %c64], %180 {strides = array<i32>} : memref<24x96xf32, #tpu.memory_space<vmem>>, vector<24x32xf32>,
    %c0_123 = arith.constant 0 : index
    %c0_124 = arith.constant 0 : index
    %182 = vector.load %arg25[%c0_123, %c0_124] : memref<24x96xf32, #tpu.memory_space<vmem>>, vector<24x96xf32>
    %c0_125 = arith.constant 0 : index
    %c0_126 = arith.constant 0 : index
    %183 = vector.load %arg16[%c0_125, %c0_126] : memref<96x32xbf16, #tpu.memory_space<vmem>>, vector<96x32xbf16>
    %184 = arith.truncf %182 : vector<24x96xf32> to vector<24x96xbf16>
    %cst_127 = arith.constant dense<0.000000e+00> : vector<24x32xf32>
    %185 = tpu.matmul %184, %183, %cst_127 {dimension_numbers = #tpu.dot_dimension_numbers<[1], [0], [0], [1], [0, 0, 1, 1], [], []>} : vector<24x96xbf16>, vector<96x32xbf16>, vector<24x32xf32> -> vector<24x32xf32>
    %c0_128 = arith.constant 0 : index
    %c0_129 = arith.constant 0 : index
    %186 = vector.load %arg17[%c0_128, %c0_129] : memref<1x32xf32, #tpu.memory_space<vmem>>, vector<1x32xf32>
    %187 = vector.broadcast %186 : vector<1x32xf32> to vector<24x32xf32>
    %188 = arith.addf %185, %187 : vector<24x32xf32>
    %cst_130 = arith.constant 0.000000e+00 : f32
    %189 = vector.broadcast %cst_130 : f32 to vector<24x32xf32>
    %190 = arith.cmpf ogt, %188, %189 : vector<24x32xf32>
    %cst_131 = arith.constant 0.000000e+00 : f32
    %191 = vector.broadcast %cst_131 : f32 to vector<24x32xf32>
    %192 = arith.minimumf %188, %191 : vector<24x32xf32>
    %193 = math.exp %192 : vector<24x32xf32>
    %cst_132 = arith.constant 1.000000e+00 : f32
    %194 = vector.broadcast %cst_132 : f32 to vector<24x32xf32>
    %195 = arith.subf %193, %194 : vector<24x32xf32>
    %196 = arith.select %190, %188, %195 : vector<24x32xi1>, vector<24x32xf32>
    %c0_133 = arith.constant 0 : index
    %c0_134 = arith.constant 0 : index
    %197 = vector.load %arg18[%c0_133, %c0_134] : memref<32x32xbf16, #tpu.memory_space<vmem>>, vector<32x32xbf16>
    %198 = arith.truncf %196 : vector<24x32xf32> to vector<24x32xbf16>
    %cst_135 = arith.constant dense<0.000000e+00> : vector<24x32xf32>
    %199 = tpu.matmul %198, %197, %cst_135 {dimension_numbers = #tpu.dot_dimension_numbers<[1], [0], [0], [1], [0, 0, 1, 1], [], []>} : vector<24x32xbf16>, vector<32x32xbf16>, vector<24x32xf32> -> vector<24x32xf32>
    %c0_136 = arith.constant 0 : index
    %c0_137 = arith.constant 0 : index
    %200 = vector.load %arg19[%c0_136, %c0_137] : memref<1x32xf32, #tpu.memory_space<vmem>>, vector<1x32xf32>
    %201 = vector.broadcast %200 : vector<1x32xf32> to vector<24x32xf32>
    %202 = arith.addf %199, %201 : vector<24x32xf32>
    %cst_138 = arith.constant 0.000000e+00 : f32
    %203 = vector.broadcast %cst_138 : f32 to vector<24x32xf32>
    %204 = arith.cmpf ogt, %202, %203 : vector<24x32xf32>
    %cst_139 = arith.constant 0.000000e+00 : f32
    %205 = vector.broadcast %cst_139 : f32 to vector<24x32xf32>
    %206 = arith.minimumf %202, %205 : vector<24x32xf32>
    %207 = math.exp %206 : vector<24x32xf32>
    %cst_140 = arith.constant 1.000000e+00 : f32
    %208 = vector.broadcast %cst_140 : f32 to vector<24x32xf32>
    %209 = arith.subf %207, %208 : vector<24x32xf32>
    %210 = arith.select %204, %202, %209 : vector<24x32xi1>, vector<24x32xf32>
    %cst_141 = arith.constant dense<0.000000e+00> : vector<32xf32>
    %211 = vector.multi_reduction <add>, %210, %cst_141 [0] : vector<24x32xf32> to vector<32xf32>
    %212 = vector.shape_cast %211 : vector<32xf32> to vector<1x32xf32>
    %cst_142 = arith.constant 2.400000e+01 : f32
    %213 = vector.broadcast %cst_142 : f32 to vector<1x32xf32>
    %214 = arith.divf %212, %213 : vector<1x32xf32>
    %215 = vector.broadcast %214 : vector<1x32xf32> to vector<24x32xf32>
    %216 = arith.subf %210, %215 : vector<24x32xf32>
    %217 = arith.mulf %216, %216 : vector<24x32xf32>
    %cst_143 = arith.constant dense<0.000000e+00> : vector<32xf32>
    %218 = vector.multi_reduction <add>, %217, %cst_143 [0] : vector<24x32xf32> to vector<32xf32>
    %219 = vector.shape_cast %218 : vector<32xf32> to vector<1x32xf32>
    %cst_144 = arith.constant 2.400000e+01 : f32
    %220 = vector.broadcast %cst_144 : f32 to vector<1x32xf32>
    %221 = arith.divf %219, %220 : vector<1x32xf32>
    %cst_145 = arith.constant 9.99999974E-6 : f32
    %222 = vector.broadcast %cst_145 : f32 to vector<1x32xf32>
    %223 = arith.addf %221, %222 : vector<1x32xf32>
    %224 = math.rsqrt %223 : vector<1x32xf32>
    %225 = vector.broadcast %224 : vector<1x32xf32> to vector<24x32xf32>
    %226 = arith.mulf %216, %225 : vector<24x32xf32>
    %c0_146 = arith.constant 0 : index
    %c0_147 = arith.constant 0 : index
    %227 = vector.load %arg20[%c0_146, %c0_147] : memref<32x128xbf16, #tpu.memory_space<vmem>>, vector<32x128xbf16>
    %228 = arith.truncf %226 : vector<24x32xf32> to vector<24x32xbf16>
    %cst_148 = arith.constant dense<0.000000e+00> : vector<24x128xf32>
    %229 = tpu.matmul %228, %227, %cst_148 {dimension_numbers = #tpu.dot_dimension_numbers<[1], [0], [0], [1], [0, 0, 1, 1], [], []>} : vector<24x32xbf16>, vector<32x128xbf16>, vector<24x128xf32> -> vector<24x128xf32>
    %c0_149 = arith.constant 0 : index
    %c0_150 = arith.constant 0 : index
    %230 = vector.load %arg21[%c0_149, %c0_150] : memref<1x128xf32, #tpu.memory_space<vmem>>, vector<1x128xf32>
    %231 = vector.broadcast %230 : vector<1x128xf32> to vector<24x128xf32>
    %232 = arith.addf %229, %231 : vector<24x128xf32>
    %c0_151 = arith.constant 0 : index
    %c0_152 = arith.constant 0 : index
    %233 = vector.load %arg22[%c0_151, %c0_152] : memref<24x128xf32, #tpu.memory_space<vmem>>, vector<24x128xf32>
    tpu.vector_store %arg22[%c0_151, %c0_152], %232 {strides = array<i32>} : memref<24x128xf32, #tpu.memory_space<vmem>>, vector<24x128xf32>,
    return
  }
}

</mosaic_0001>

<bundles_post_ra>
// kernel: tpu_custom_call.1
= control target key start
LH: loop header
LB: loop body
LE: loop exit
PB: predicated region body
PF: predicated region fallthrough
CT: control target
= control target key end

     0   :  { %s2452_s0 = inlined_call_operand.hbm [shape: bf16[8,32], index: 0, kind: input, shape index: {}]   ;;  %s2453_s1 = inlined_call_operand.vmem [shape: bf16[12,4], index: 1, kind: input, shape index: {}]   ;;  %s2454_s2 = inlined_call_operand.vmem [shape: bf16[12,4], index: 2, kind: input, shape index: {}]   ;;  %s2455_s3 = inlined_call_operand.hbm [shape: bf16[4,12], index: 3, kind: input, shape index: {}]   ;;  %s2456_s4 = inlined_call_operand.vmem [shape: bf16[32,32], index: 4, kind: input, shape index: {}]   ;;  %s2457_s5 = inlined_call_operand.hbm [shape: f32[1,32], index: 5, kind: input, shape index: {}]   ;;  %s2458_s6 = inlined_call_operand.vmem [shape: bf16[32,32], index: 6, kind: input, shape index: {}]   ;;  %s2459_s7 = inlined_call_operand.hbm [shape: f32[1,32], index: 7, kind: input, shape index: {}]   ;;  %s2460_s8 = inlined_call_operand.vmem [shape: bf16[64,32], index: 8, kind: input, shape index: {}]   ;;  %s2461_s9 = inlined_call_operand.vmem [shape: f32[1,32], index: 9, kind: input, shape index: {}]   ;;  %s2462_s10 = inlined_call_operand.vmem [shape: bf16[32,32], index: 10, kind: input, shape index: {}]   ;;  %s2463_s11 = inlined_call_operand.vmem [shape: f32[1,32], index: 11, kind: input, shape index: {}]   ;;  %s2464_s12 = inlined_call_operand.vmem [shape: bf16[32,32], index: 12, kind: input, shape index: {}]   ;;  %s2465_s13 = inlined_call_operand.vmem [shape: f32[1,32], index: 13, kind: input, shape index: {}]   ;;  %s2466_s14 = inlined_call_operand.vmem [shape: bf16[32,32], index: 14, kind: input, shape index: {}]   ;;  %s2467_s15 = inlined_call_operand.vmem [shape: f32[1,32], index: 15, kind: input, shape index: {}]   ;;  %s2468_s16 = inlined_call_operand.vmem [shape: bf16[96,32], index: 16, kind: input, shape index: {}]   ;;  %s2469_s17 = inlined_call_operand.vmem [shape: f32[1,32], index: 17, kind: input, shape index: {}]   ;;  %s2470_s18 = inlined_call_operand.vmem [shape: bf16[32,32], index: 18, kind: input, shape index: {}]   ;;  %s2471_s19 = inlined_call_operand.vmem [shape: f32[1,32], index: 19, kind: input, shape index: {}]   ;;  %s2472_s20 = inlined_call_operand.vmem [shape: bf16[32,128], index: 20, kind: input, shape index: {}]   ;;  %s2473_s21 = inlined_call_operand.vmem [shape: f32[1,128], index: 21, kind: input, shape index: {}]   ;;  %s2474_s22 = inlined_call_operand.hbm [shape: f32[24,128], index: 22, kind: output, shape index: {}]  }
   0x1   :  { %2477 = sst [smem:[#allocation18_spill]] %s2452_s0 }
   0x2   :  { %2478 = sst [smem:[#allocation19_spill]] %s2453_s1 }
   0x3   :  { %2479 = sst [smem:[#allocation20_spill]] %s2454_s2 }
   0x4   :  { %2480 = sst [smem:[#allocation21_spill]] %s2455_s3 }
   0x5   :  { %2481 = sst [smem:[#allocation22_spill]] %s2456_s4 }
   0x6   :  { %2482 = sst [smem:[#allocation23_spill]] %s2457_s5 }
   0x7   :  { %2483 = sst [smem:[#allocation24_spill]] %s2458_s6 }
   0x8   :  { %27 = vsyncpa [#allocation6], 0 }
   0x9   :  { %28 = vsyncpa [#allocation9], 0 }
   0xa   :  { %29 = vsyncpa [#allocation12], 0 }
   0xb   :  { %30 = vsyncpa [#allocation7], 0  ;;  %s2082_s3 = smov [#allocation8]   ;;  %s2083_s29 = smov [#allocation5]  }
   0xc   :  { %s51_s28 = sshll.u32 %s2082_s3, 4  ;;  %s37_s30 = sshll.u32 %s2083_s29, 4  ;;  %s52_s28 = int_to_ptr.vmem [resolvable:$true] %s51_s28  ;;  %s38_s30 = int_to_ptr.vmem [resolvable:$true] %s37_s30 }
   0xd   :  { %s1982_s4 = scalar_lea.vmem %s52_s28, 32  ;;  %p1987_p1 = scmp.lt.s32.totalorder %s52_s28, %s52_s28 }
   0xe   :  { %p1983_p0 = scmp.ne.s32.totalorder %s52_s28, %s1982_s4  ;;  %p1988_p2 = scmp.lt.s32.totalorder %s1982_s4, %s1982_s4 }
  0x10   :  { %p1989_p3 = por %p1988_p2, %p1987_p1 }
  0x12   :  { %p1990_p4 = pnand %p1989_p3, %p1983_p0 }
  0x14   :  { %1993 = shalt.err (!%p1990_p4)
}
  0x15   :  { %s2484_s1 = sld [smem:[#allocation21_spill]]  ;;  %s2002_s5 = scalar_lea.vmem %s38_s30, 64 }
  0x16   :  { %p2003_p5 = scmp.ne.s32.totalorder %s38_s30, %s2002_s5  ;;  %p2007_p6 = scmp.lt.s32.totalorder %s38_s30, %s38_s30 }
  0x17   :  { %p2008_p7 = scmp.lt.s32.totalorder %s2002_s5, %s2002_s5 }
  0x19   :  { %p2009_p8 = por %p2008_p7, %p2007_p6 }
  0x1b   :  { %54 = dma.hbm_to_vmem [thread:$0]  %s2484_s1, 32, %s52_s28, [#allocation9]  }
  0x1c   :  { %p2010_p9 = pnand %p2009_p8, %p2003_p5 }
  0x1e   :  { %2013 = shalt.err (!%p2010_p9)
}
  0x1f   :  { %s2485_s25 = sld [smem:[#allocation18_spill]]  ;;  %s2084_s26 = smov [#allocation10]  }
  0x20   :  { %s63_s2 = sshll.u32 %s2084_s26, 4  ;;  %s2085_s27 = smov [#allocation11]   ;;  %s64_s2 = int_to_ptr.vmem [resolvable:$true] %s63_s2 }
  0x21   :  { %s75_s3 = sshll.u32 %s2085_s27, 4  ;;  %s2022_s29 = scalar_lea.vmem %s64_s2, 16  ;;  %s76_s3 = int_to_ptr.vmem [resolvable:$true] %s75_s3 }
  0x22   :  { %p2023_p10 = scmp.ne.s32.totalorder %s64_s2, %s2022_s29  ;;  %s2026_s28 = scalar_lea.vmem %s64_s2, 32 }
  0x23   :  { %p2027_p11 = scmp.lt.s32.totalorder %s64_s2, %s64_s2  ;;  %p2028_p12 = scmp.lt.s32.totalorder %s2026_s28, %s2022_s29 }
  0x25   :  { %40 = dma.hbm_to_vmem [thread:$0]  %s2485_s25, 64, %s38_s30, [#allocation6]  }
  0x26   :  { %p2029_p13 = por %p2028_p12, %p2027_p11 }
  0x28   :  { %p2030_p0 = pnand %p2029_p13, %p2023_p10 }
  0x2a   :  { %2033 = shalt.err (!%p2030_p0)
}
  0x2b   :  { %s2486_s23 = sld [smem:[#allocation23_spill]]  ;;  %s2042_s1 = scalar_lea.vmem %s76_s3, 16 }
  0x2c   :  { %p2043_p1 = scmp.ne.s32.totalorder %s76_s3, %s2042_s1  ;;  %s2046_s30 = scalar_lea.vmem %s76_s3, 32 }
  0x2d   :  { %p2047_p2 = scmp.lt.s32.totalorder %s76_s3, %s76_s3  ;;  %p2048_p3 = scmp.lt.s32.totalorder %s2046_s30, %s2042_s1 }
  0x2f   :  { %p2049_p4 = por %p2048_p3, %p2047_p2 }
  0x31   :  { %66 = dma.hbm_to_vmem [thread:$0]  %s2486_s23, 16, %s64_s2, [#allocation9]  }
  0x32   :  { %p2050_p5 = pnand %p2049_p4, %p2043_p1 }
  0x34   :  { %2053 = shalt.err (!%p2050_p5)
}
  0x35   :  { %78 = dma.hbm_to_vmem [thread:$0]  %s2459_s7, 16, %s76_s3, [#allocation12]  }
  0x36   :  { %2074 = dma.done.wait [#allocation6], 64  }
  0x37   :  { %2075 = vsyncadd [#allocation6], 4294967232 }
  0x38   :  { %2076 = dma.done.wait [#allocation9], 48  }
  0x39   :  { %2077 = vsyncadd [#allocation9], 4294967248 }
  0x3a   :  { %2078 = dma.done.wait [#allocation12], 16  }
  0x3b   :  { %2079 = vsyncadd [#allocation12], 4294967280  ;;  %v2086_v0 = vmov 0.0   ;;  %vm2087_vm0 = vmmov 0   ;;  %s2487_s25 = sld [smem:[#allocation22_spill]]  ;;  %vm149_vm1 = vcmask 261120  }
  0x3c   :  { %1753 = vmatprep.subr.bf16.mxu0 %v2086_v0  ;;  %1757 = vmatprep.mubr.msk.bf16.mxu0 %vm2087_vm0, %v2086_v0  ;;  %v125_v3 = vld [vmem:[#allocation5] sm:$0xf]  ;;  %s2488_s29 = sld [smem:[#allocation24_spill]]  ;;  %v1620_v6 = vld [vmem:[#allocation10] ss:$0 sm:$0xff]  ;;  %vm306_vm4 = vcmask 1041408  }
  0x3d   :  { %1761 = vmatprep.subr.bf16.mxu1 %v2086_v0  ;;  %1765 = vmatprep.mubr.msk.bf16.mxu1 %vm2087_vm0, %v2086_v0  ;;  %v1625_v18 = vld [vmem:[#allocation11] ss:$0 sm:$0xff]  ;;  %s2489_s1 = sld [smem:[#allocation20_spill]]  ;;  %vm302_vm5 = vcmask 31744   ;;  %v1914_v58 = vld [vmem:[%s2460_s8 + $0x18] sm:$0xff]   ;;  %v1915_v59 = vld [vmem:[%s2460_s8 + $0x10] sm:$0xff]  }
  0x3e   :  { %s2490_s24 = sld [smem:[#allocation19_spill]]  ;;  %v1916_v62 = vld [vmem:[%s2460_s8 + $0x8] sm:$0xff]   ;;  %v1917_v63 = vld [vmem:[%s2460_s8] sm:$0xff]   ;;  %s2088_s28 = smov 32   ;;  %vm352_vm6 = vcmask 257024   ;;  %vm411_vm7 = vcmask 523520  }
  0x3f   :  { %vm413_vm8 = vcmask 519424   ;;  %vm558_vm9 = vcmask 523264   ;;  %s2090_s3 = smov [#allocation13]  }
  0x41   :  { %v1908_v1 = vld [vmem:[%s2487_s25 + $0x8] sm:$0xff]   ;;  %v1909_v2 = vld [vmem:[%s2487_s25] sm:$0xff]  }
  0x42   :  { %1754 = vmatpush3.bf16.msra.mxu0 %v1908_v1  ;;  %v1910_v4 = vld [vmem:[%s2488_s29 + $0x8] sm:$0xff]   ;;  %v1911_v5 = vld [vmem:[%s2488_s29] sm:$0xff]  }
  0x43   :  { %1755 = vmatprep.subr.bf16.mxu0 %v2086_v0  ;;  %1762 = vmatpush3.bf16.msra.mxu1 %v1910_v4  ;;  %v2255_v54 = vld [vmem:[%s2489_s1] sm:$0x3f]  }
  0x44   :  { %1763 = vmatprep.subr.bf16.mxu1 %v2086_v0  ;;  %v2260_v55 = vld [vmem:[%s2490_s24] sm:$0x3f]  }
  0x46   :  { %1756 = vmatpush3.bf16.msra.mxu0 %v1909_v2 }
  0x47   :  { %1769 = vmatprep.subr.bf16.mxu0 %v2086_v0  ;;  %1764 = vmatpush3.bf16.msra.mxu1 %v1911_v5 }
  0x48   :  { %1775 = vmatprep.subr.bf16.mxu1 %v2086_v0 }
  0x49   :  { %1758 = vmatmul.mubr.msk.bf16.vlgmr.msra.gmra.mxu0 %vm149_vm1, %v125_v3 }
  0x4a   :  { %1771 = vmatprep.mubr.msk.bf16.mxu0 %vm2087_vm0, %v2086_v0 }
 0x109   :  { %v187_v7 = vpop.f32.mrf.mxu0 }
 0x10a   :  { %v188_v8 = vadd.f32 %v1620_v6, %v187_v7 }
 0x10b   :  { %v1759_v9 = vpop.f32.mrf.mxu0 }
 0x10c   :  { %v194_v10 = vmin.f32 %v188_v8, 0.0  ;;  %vm193_vm2 = vcmp.gt.f32.partialorder %v188_v8, 0.0 }
 0x10d   :  { %v190_v11 = vpop.f32.mrf.mxu0 }
 0x10e   :  { %v195_v12 = vmul.f32 1.442695, %v194_v10 }
 0x10f   :  { %v1760_v13 = vpop.f32.mrf.mxu0 }
 0x110   :  { %1934 = vpow2.f32 %v195_v12 }
 0x11d   :  { %v1935_v14 = vpop.eup %1934 }
 0x11e   :  { %v1624_v15 = vadd.f32 -1.0, %v1935_v14 }
 0x120   :  { %v198_v16 = vsel %vm193_vm2, %v188_v8, %v1624_v15  ;;  %vm774_vm2 = vcmask 1045504  }
 0x121   :  { %v203_v17 = vpack.c.bf16 %v198_v16, %v198_v16 }
 0x123   :  { %1766 = vmatmul.mubr.msk.bf16.vlgmr.msra.gmra.mxu1 %vm149_vm1, %v203_v17 }
 0x124   :  { %1777 = vmatprep.mubr.msk.bf16.mxu1 %vm2087_vm0, %v2086_v0 }
 0x1e3   :  { %v260_v19 = vpop.f32.mrf.mxu1 }
 0x1e4   :  { %v261_v20 = vadd.f32 %v1625_v18, %v260_v19 }
 0x1e5   :  { %v1767_v21 = vpop.f32.mrf.mxu1 }
 0x1e6   :  { %v267_v22 = vmin.f32 %v261_v20, 0.0  ;;  %vm266_vm3 = vcmp.gt.f32.partialorder %v261_v20, 0.0 }
 0x1e7   :  { %v263_v23 = vpop.f32.mrf.mxu1 }
 0x1e8   :  { %v268_v24 = vmul.f32 1.442695, %v267_v22 }
 0x1e9   :  { %v1768_v25 = vpop.f32.mrf.mxu1 }
 0x1ea   :  { %1936 = vpow2.f32 %v268_v24  ;;  %v1918_v24 = vld [vmem:[%s2462_s10 + $0x8] sm:$0xff]   ;;  %v1919_v25 = vld [vmem:[%s2462_s10] sm:$0xff]  }
 0x1f7   :  { %v1937_v26 = vpop.eup %1936 }
 0x1f8   :  { %v1629_v27 = vadd.f32 -1.0, %v1937_v26  ;;  %v1636_v26 = vld [vmem:[%s2461_s9] ss:$0 sm:$0xff] }
 0x1fa   :  { %v271_v28 = vsel %vm266_vm3, %v261_v20, %v1629_v27  ;;  %vm770_vm3 = vcmask 97280  }
 0x1fb   :  { %v272_v29 = vsel %vm149_vm1, %v271_v28, 0.0 }
 0x1fc   :  { %v273_v30 = vrot.slane %v272_v29, 4 }
 0x1fe   :  { %v274_v31 = vadd.f32 %v273_v30, %v272_v29 }
 0x200   :  { %v275_v32 = vrot.slane %v274_v31, 2 }
 0x202   :  { %v276_v33 = vadd.f32 %v275_v32, %v274_v31 }
 0x204   :  { %v277_v34 = vrot.slane %v276_v33, 1 }
 0x206   :  { %v278_v35 = vadd.f32 %v277_v34, %v276_v33 }
 0x208   :  { %v280_v36 = vmul.f32 0.125, %v278_v35 }
 0x20a   :  { %v281_v37 = vsub.f32 %v271_v28, %v280_v36 }
 0x20c   :  { %v282_v38 = vmul.f32 %v281_v37, %v281_v37 }
 0x20e   :  { %v283_v39 = vsel %vm149_vm1, %v282_v38, 0.0 }
 0x20f   :  { %v284_v40 = vrot.slane %v283_v39, 4 }
 0x211   :  { %v285_v41 = vadd.f32 %v284_v40, %v283_v39 }
 0x213   :  { %v286_v42 = vrot.slane %v285_v41, 2 }
 0x215   :  { %v287_v43 = vadd.f32 %v286_v42, %v285_v41 }
 0x217   :  { %v288_v44 = vrot.slane %v287_v43, 1 }
 0x219   :  { %v289_v45 = vadd.f32 %v288_v44, %v287_v43 }
 0x21b   :  { %v290_v46 = vmul.f32 0.125, %v289_v45 }
 0x21d   :  { %v291_v47 = vadd.f32 1e-05, %v290_v46 }
 0x21f   :  { %1938 = vrsqrt.f32 %v291_v47 }
 0x22c   :  { %v1939_v48 = vpop.eup %1938 }
 0x22d   :  { %v293_v49 = vmul.f32 %v1939_v48, %v281_v37 }
 0x22f   :  { %294 = vst.msk [vmem:[#allocation2] sm:$0xff] %vm149_vm1, %v293_v49 }
 0x236   :  { %v295_v50 = vld [vmem:[#allocation2] sm:$0xf]  ;;  %v415_v51 = vld [vmem:[#allocation2 + $0x4] sm:$0xf] }
 0x237   :  { %v296_v52 = vpack.c.bf16 %v295_v50, %v295_v50  ;;  %v416_v56 = vpack.c.bf16 %v415_v51, %v415_v51  ;;  %v1646_v51 = vld [vmem:[%s2463_s11] ss:$0 sm:$0xff]  ;;  %s2089_s11 = smov 64  }
 0x239   :  { %v308_v53 = vsel %vm306_vm4, %v296_v52, 0  ;;  %v418_v57 = vsel %vm306_vm4, %v416_v56, 0 }
 0x23a   :  { %1770 = vmatpush3.bf16.msra.mxu0 %v308_v53  ;;  %1776 = vmatpush3.bf16.msra.mxu1 %v308_v53 }
 0x23b   :  { %1781 = vmatprep.subr.bf16.mxu0 %v2086_v0  ;;  %1787 = vmatprep.subr.bf16.mxu1 %v2086_v0 }
 0x23d   :  { %1778 = vmatmul.mubr.msk.bf16.vlgmr.msra.gmra.mxu1 %vm302_vm5, %v2255_v54  ;;  %1772 = vmatmul.mubr.msk.bf16.vlgmr.msra.gmra.mxu0 %vm302_vm5, %v2260_v55 }
 0x23e   :  { %1782 = vmatpush3.bf16.msra.mxu0 %v418_v57  ;;  %1788 = vmatpush3.bf16.msra.mxu1 %v418_v57 }
 0x23f   :  { %1789 = vmatprep.mubr.msk.bf16.mxu1 %vm2087_vm0, %v2086_v0  ;;  %1783 = vmatprep.mubr.msk.bf16.mxu0 %vm2087_vm0, %v2086_v0 }
 0x240   :  { %1793 = vmatprep.subr.bf16.mxu0 %v1914_v58  ;;  %1805 = vmatprep.subr.bf16.mxu1 %v1918_v24 }
 0x245   :  { %1790 = vmatmul.mubr.msk.bf16.vlgmr.msra.gmra.mxu1 %vm302_vm5, %v2255_v54  ;;  %1784 = vmatmul.mubr.msk.bf16.vlgmr.msra.gmra.mxu0 %vm302_vm5, %v2260_v55 }
 0x246   :  { %1794 = vmatpush3.bf16.msra.mxu0 %v1914_v58  ;;  %1806 = vmatpush3.bf16.msra.mxu1 %v1918_v24 }
 0x247   :  { %1795 = vmatprep.subr.bf16.mxu0 %v1915_v59  ;;  %1807 = vmatprep.subr.bf16.mxu1 %v1919_v25 }
 0x24a   :  { %1796 = vmatpush3.bf16.msra.mxu0 %v1915_v59  ;;  %1808 = vmatpush3.bf16.msra.mxu1 %v1919_v25 }
 0x24b   :  { %1797 = vmatprep.subr.bf16.mxu0 %v1916_v62  ;;  %1813 = vmatprep.subr.bf16.mxu1 %v2086_v0 }
 0x24e   :  { %1798 = vmatpush3.bf16.msra.mxu0 %v1916_v62 }
 0x24f   :  { %1799 = vmatprep.subr.bf16.mxu0 %v1917_v63 }
 0x252   :  { %1800 = vmatpush3.bf16.msra.mxu0 %v1917_v63 }
 0x253   :  { %1819 = vmatprep.subr.bf16.mxu0 %v2086_v0 }
 0x2fd   :  { %v396_v60 = vpop.f32.mrf.mxu1  ;;  %v344_v61 = vpop.f32.mrf.mxu0 }
 0x2fe   :  { %405 = vrot.lane.b32.xlu0 %v396_v60, %s2088_s28  ;;  %351 = vst.msk [vmem:[#allocation4] sm:$0xff] %vm149_vm1, %v344_v61 }
 0x2ff   :  { %v1779_v1 = vpop.f32.mrf.mxu1  ;;  %v1773_v2 = vpop.f32.mrf.mxu0 }
 0x301   :  { %v399_v3 = vpop.f32.mrf.mxu1  ;;  %v347_v4 = vpop.f32.mrf.mxu0 }
 0x302   :  { %407 = vrot.lane.b32.xlu0 %v399_v3, %s2088_s28  ;;  %353 = vst.msk [vmem:[#allocation4 + $0x8] sm:$0xf] %vm352_vm6, %v347_v4 }
 0x303   :  { %v1780_v5 = vpop.f32.mrf.mxu1  ;;  %v1774_v6 = vpop.f32.mrf.mxu0 }
 0x305   :  { %v497_v7 = vpop.f32.mrf.mxu1  ;;  %v454_v8 = vpop.f32.mrf.mxu0 }
 0x306   :  { %506 = vrot.lane.b32.xlu1 %v497_v7, %s2088_s28  ;;  %461 = vst.msk [vmem:[#allocation4 + $0xc] sm:$0xff] %vm149_vm1, %v454_v8 }
 0x307   :  { %v1791_v9 = vpop.f32.mrf.mxu1  ;;  %v1785_v10 = vpop.f32.mrf.mxu0 }
 0x309   :  { %v500_v11 = vpop.f32.mrf.mxu1  ;;  %v457_v12 = vpop.f32.mrf.mxu0 }
 0x30a   :  { %508 = vrot.lane.b32.xlu1 %v500_v11, %s2088_s28  ;;  %462 = vst.msk [vmem:[#allocation4 + $0x14] sm:$0xf] %vm352_vm6, %v457_v12 }
 0x30b   :  { %v1792_v13 = vpop.f32.mrf.mxu1  ;;  %v1786_v14 = vpop.f32.mrf.mxu0 }
 0x370   :  { %v406_v15 = vpop.permute.xlu0 %405 }
 0x371   :  { %412 = vst.msk [vmem:[#allocation4] sm:$0xff] %vm411_vm7, %v406_v15 }
 0x374   :  { %v408_v16 = vpop.permute.xlu0 %407 }
 0x375   :  { %414 = vst.msk [vmem:[#allocation4 + $0x8] sm:$0xf] %vm413_vm8, %v408_v16 }
 0x378   :  { %v507_v17 = vpop.permute.xlu1 %506  ;;  %v514_v19 = vld [vmem:[#allocation4] sm:$0xff] }
 0x379   :  { %512 = vst.msk [vmem:[#allocation4 + $0xc] sm:$0xff] %vm411_vm7, %v507_v17 }
 0x37c   :  { %v509_v18 = vpop.permute.xlu1 %508 }
 0x37d   :  { %513 = vst.msk [vmem:[#allocation4 + $0x14] sm:$0xf] %vm413_vm8, %v509_v18 }
 0x380   :  { %v515_v20 = vld [vmem:[#allocation4 + $0x8] sm:$0xff] }
 0x381   :  { %v525_v21 = vpack.c.bf16 %v515_v20, %v514_v19 }
 0x383   :  { %1801 = vmatprep.mubr.msk.bf16.mxu0 %vm558_vm9, %v525_v21 }
 0x384   :  { %v516_v22 = vld [vmem:[#allocation4 + $0x10] sm:$0xff] }
 0x385   :  { %v526_v23 = vpack.c.bf16 %v516_v22, %v516_v22 }
 0x387   :  { %1802 = vmatmul.mubr.msk.bf16.vlgmr.msra.gmra.mxu0 %vm558_vm9, %v526_v23 }
 0x388   :  { %1821 = vmatprep.mubr.msk.bf16.mxu0 %vm2087_vm0, %v2086_v0 }
 0x447   :  { %v1803_v27 = vpop.f32.mrf.mxu0 }
 0x448   :  { %v608_v28 = vadd.f32 %v1803_v27, %v1636_v26 }
 0x449   :  { %v599_v29 = vpop.f32.mrf.mxu0 }
 0x44a   :  { %v618_v30 = vmin.f32 %v608_v28, 0.0  ;;  %v600_v31 = vadd.f32 %v1636_v26, %v599_v29  ;;  %vm615_vm10 = vcmp.gt.f32.partialorder %v608_v28, 0.0 }
 0x44b   :  { %v1804_v32 = vpop.f32.mrf.mxu0 }
 0x44c   :  { %v623_v33 = vmul.f32 1.442695, %v618_v30  ;;  %v616_v34 = vmin.f32 %v600_v31, 0.0  ;;  %vm613_vm11 = vcmp.gt.f32.partialorder %v600_v31, 0.0 }
 0x44d   :  { %v602_v35 = vpop.f32.mrf.mxu0 }
 0x44e   :  { %v619_v36 = vmul.f32 1.442695, %v616_v34  ;;  %v603_v37 = vadd.f32 %v1636_v26, %v602_v35  ;;  %1940 = vpow2.f32 %v623_v33 }
 0x450   :  { %1942 = vpow2.f32 %v619_v36  ;;  %v617_v38 = vmin.f32 %v603_v37, 0.0  ;;  %vm614_vm12 = vcmp.gt.f32.partialorder %v603_v37, 0.0 }
 0x452   :  { %v621_v39 = vmul.f32 1.442695, %v617_v38 }
 0x454   :  { %1944 = vpow2.f32 %v621_v39 }
 0x45b   :  { %v1941_v40 = vpop.eup %1940 }
 0x45c   :  { %v1645_v42 = vadd.f32 -1.0, %v1941_v40 }
 0x45d   :  { %v1943_v41 = vpop.eup %1942 }
 0x45e   :  { %v1643_v43 = vadd.f32 -1.0, %v1943_v41  ;;  %v630_v46 = vsel %vm615_vm10, %v608_v28, %v1645_v42 }
 0x45f   :  { %v636_v50 = vpack.c.bf16 %v630_v46, %v630_v46 }
 0x460   :  { %v628_v47 = vsel %vm613_vm11, %v600_v31, %v1643_v43 }
 0x461   :  { %v1945_v44 = vpop.eup %1944 }
 0x462   :  { %v1644_v45 = vadd.f32 -1.0, %v1945_v44 }
 0x464   :  { %v629_v48 = vsel %vm614_vm12, %v603_v37, %v1644_v45 }
 0x465   :  { %v635_v49 = vpack.c.bf16 %v629_v48, %v628_v47 }
 0x467   :  { %1809 = vmatprep.mubr.msk.bf16.mxu1 %vm149_vm1, %v635_v49 }
 0x468   :  { %1810 = vmatmul.mubr.msk.bf16.vlgmr.msra.gmra.mxu1 %vm149_vm1, %v636_v50 }
 0x469   :  { %1815 = vmatprep.mubr.msk.bf16.mxu1 %vm2087_vm0, %v2086_v0 }
 0x528   :  { %v1811_v52 = vpop.f32.mrf.mxu1 }
 0x529   :  { %v705_v53 = vadd.f32 %v1811_v52, %v1646_v51 }
 0x52a   :  { %v696_v56 = vpop.f32.mrf.mxu1 }
 0x52b   :  { %v715_v57 = vmin.f32 %v705_v53, 0.0  ;;  %v697_v58 = vadd.f32 %v1646_v51, %v696_v56  ;;  %vm712_vm14 = vcmp.gt.f32.partialorder %v705_v53, 0.0 }
 0x52c   :  { %v1812_v59 = vpop.f32.mrf.mxu1 }
 0x52d   :  { %v720_v60 = vmul.f32 1.442695, %v715_v57  ;;  %v713_v61 = vmin.f32 %v697_v58, 0.0  ;;  %vm710_vm13 = vcmp.gt.f32.partialorder %v697_v58, 0.0  ;;  %v1920_v59 = vld [vmem:[%s2464_s12 + $0x8] sm:$0xff]  }
 0x52e   :  { %v699_v62 = vpop.f32.mrf.mxu1 }
 0x52f   :  { %v716_v63 = vmul.f32 1.442695, %v713_v61  ;;  %v700_v1 = vadd.f32 %v1646_v51, %v699_v62  ;;  %1946 = vpow2.f32 %v720_v60  ;;  %v1921_v60 = vld [vmem:[%s2464_s12] sm:$0xff]  }
 0x531   :  { %1948 = vpow2.f32 %v716_v63  ;;  %v714_v2 = vmin.f32 %v700_v1, 0.0  ;;  %vm711_vm15 = vcmp.gt.f32.partialorder %v700_v1, 0.0 }
 0x533   :  { %v718_v3 = vmul.f32 1.442695, %v714_v2 }
 0x535   :  { %1950 = vpow2.f32 %v718_v3 }
 0x53c   :  { %v1947_v4 = vpop.eup %1946 }
 0x53d   :  { %v1653_v7 = vadd.f32 -1.0, %v1947_v4 }
 0x53e   :  { %v1949_v5 = vpop.eup %1948 }
 0x53f   :  { %v1651_v6 = vadd.f32 -1.0, %v1949_v5  ;;  %v727_v11 = vsel %vm712_vm14, %v705_v53, %v1653_v7 }
 0x540   :  { %v731_v16 = vsel %vm149_vm1, %v727_v11, 0.0 }
 0x541   :  { %v725_v9 = vsel %vm710_vm13, %v697_v58, %v1651_v6  ;;  %v124_v58 = vld [vmem:[#allocation8] sm:$0x3] }
 0x542   :  { %v1951_v8 = vpop.eup %1950  ;;  %v728_v13 = vsel %vm149_vm1, %v725_v9, 0.0 }
 0x543   :  { %v1652_v10 = vadd.f32 -1.0, %v1951_v8 }
 0x545   :  { %v726_v12 = vsel %vm711_vm15, %v700_v1, %v1652_v10  ;;  %v1922_v10 = vld [vmem:[%s2466_s14 + $0x8] sm:$0xff]  }
 0x546   :  { %v729_v14 = vsel %vm149_vm1, %v726_v12, 0.0 }
 0x547   :  { %v730_v15 = vadd.f32 %v729_v14, %v728_v13 }
 0x549   :  { %v732_v17 = vadd.f32 %v731_v16, %v730_v15 }
 0x54b   :  { %v733_v18 = vrot.slane %v732_v17, 4 }
 0x54d   :  { %v734_v19 = vadd.f32 %v733_v18, %v732_v17 }
 0x54f   :  { %v735_v20 = vrot.slane %v734_v19, 2 }
 0x551   :  { %v736_v21 = vadd.f32 %v735_v20, %v734_v19 }
 0x553   :  { %v737_v22 = vrot.slane %v736_v21, 1 }
 0x555   :  { %v738_v23 = vadd.f32 %v737_v22, %v736_v21 }
 0x557   :  { %v740_v24 = vmul.f32 0.041666668, %v738_v23 }
 0x559   :  { %v741_v25 = vsub.f32 %v725_v9, %v740_v24  ;;  %v742_v26 = vsub.f32 %v726_v12, %v740_v24  ;;  %v743_v27 = vsub.f32 %v727_v11, %v740_v24  ;;  %v1923_v11 = vld [vmem:[%s2466_s14] sm:$0xff]   ;;  %s1606_s14 = sshll.u32 %s2090_s3, 4  ;;  %s1607_s14 = int_to_ptr.vmem [resolvable:$true] %s1606_s14 }
 0x55a   :  { %v1656_v12 = vld [vmem:[%s2465_s13] ss:$0 sm:$0xff]  ;;  %s2054_s13 = scalar_lea.vmem %s1607_s14, 384  ;;  %p2059_p7 = scmp.lt.s32.totalorder %s1607_s14, %s1607_s14 }
 0x55b   :  { %v744_v28 = vmul.f32 %v741_v25, %v741_v25  ;;  %v745_v29 = vmul.f32 %v742_v26, %v742_v26  ;;  %v746_v30 = vmul.f32 %v743_v27, %v743_v27  ;;  %v1661_v24 = vld [vmem:[%s2467_s15] ss:$0 sm:$0xff]  ;;  %p2055_p6 = scmp.ne.s32.totalorder %s1607_s14, %s2054_s13  ;;  %p2060_p8 = scmp.lt.s32.totalorder %s2054_s13, %s2054_s13 }
 0x55d   :  { %v747_v31 = vsel %vm149_vm1, %v744_v28, 0.0  ;;  %v748_v32 = vsel %vm149_vm1, %v745_v29, 0.0  ;;  %v750_v34 = vsel %vm149_vm1, %v746_v30, 0.0  ;;  %p2061_p9 = por %p2060_p8, %p2059_p7 }
 0x55e   :  { %v749_v33 = vadd.f32 %v748_v32, %v747_v31 }
 0x55f   :  { %p2062_p10 = pnand %p2061_p9, %p2055_p6 }
 0x560   :  { %v751_v35 = vadd.f32 %v750_v34, %v749_v33 }
 0x562   :  { %v752_v36 = vrot.slane %v751_v35, 4 }
 0x564   :  { %v753_v37 = vadd.f32 %v752_v36, %v751_v35 }
 0x566   :  { %v754_v38 = vrot.slane %v753_v37, 2 }
 0x568   :  { %v755_v39 = vadd.f32 %v754_v38, %v753_v37 }
 0x56a   :  { %v756_v40 = vrot.slane %v755_v39, 1 }
 0x56c   :  { %v757_v41 = vadd.f32 %v756_v40, %v755_v39 }
 0x56e   :  { %v758_v42 = vmul.f32 0.041666668, %v757_v41 }
 0x570   :  { %v759_v43 = vadd.f32 1e-05, %v758_v42 }
 0x572   :  { %1952 = vrsqrt.f32 %v759_v43 }
 0x57f   :  { %v1953_v44 = vpop.eup %1952 }
 0x580   :  { %v761_v45 = vmul.f32 %v1953_v44, %v741_v25  ;;  %v762_v46 = vmul.f32 %v1953_v44, %v742_v26  ;;  %v763_v47 = vmul.f32 %v1953_v44, %v743_v27 }
 0x582   :  { %764 = vst.msk [vmem:[#allocation3] sm:$0xff] %vm149_vm1, %v761_v45  ;;  %765 = vst.msk [vmem:[#allocation3 + $0x8] sm:$0xff] %vm149_vm1, %v762_v46 }
 0x583   :  { %766 = vst.msk [vmem:[#allocation3 + $0x10] sm:$0xff] %vm149_vm1, %v763_v47 }
 0x589   :  { %v1235_v48 = vld [vmem:[#allocation3] sm:$0xff]  ;;  %v768_v49 = vld [vmem:[#allocation3 + $0x8] sm:$0xf] }
 0x58a   :  { %v820_v50 = vld [vmem:[#allocation3 + $0xc] sm:$0xff]  ;;  %1241 = vrot.lane.b32.xlu0 %v1235_v48, %s2089_s11  ;;  %v769_v51 = vpack.c.bf16 %v768_v49, %v1235_v48  ;;  %v821_v52 = vld [vmem:[#allocation3 + $0x14] sm:$0xf] }
 0x58b   :  { %v822_v53 = vpack.c.bf16 %v821_v52, %v820_v50 }
 0x58c   :  { %v776_v56 = vsel %vm774_vm2, %v769_v51, 0 }
 0x58d   :  { %1814 = vmatpush3.bf16.msra.mxu1 %v776_v56  ;;  %v824_v57 = vsel %vm774_vm2, %v822_v53, 0 }
 0x58e   :  { %1820 = vmatpush3.bf16.msra.mxu0 %v824_v57  ;;  %1825 = vmatprep.subr.bf16.mxu1 %v2086_v0 }
 0x58f   :  { %1833 = vmatprep.subr.bf16.mxu0 %v2086_v0 }
 0x590   :  { %1816 = vmatmul.mubr.msk.bf16.vlgmr.msra.gmra.mxu1 %vm770_vm3, %v124_v58 }
 0x591   :  { %1822 = vmatmul.mubr.msk.bf16.vlgmr.msra.gmra.mxu0 %vm770_vm3, %v124_v58  ;;  %1829 = vmatprep.mubr.msk.bf16.mxu1 %vm2087_vm0, %v2086_v0 }
 0x592   :  { %1837 = vmatprep.mubr.msk.bf16.mxu0 %vm2087_vm0, %v2086_v0  ;;  %1826 = vmatpush3.bf16.msra.mxu1 %v1920_v59 }
 0x593   :  { %1827 = vmatprep.subr.bf16.mxu1 %v2086_v0  ;;  %1834 = vmatpush3.bf16.msra.mxu0 %v1922_v10 }
 0x594   :  { %1835 = vmatprep.subr.bf16.mxu0 %v2086_v0 }
 0x596   :  { %1828 = vmatpush3.bf16.msra.mxu1 %v1921_v60 }
 0x597   :  { %1841 = vmatprep.subr.bf16.mxu1 %v2086_v0  ;;  %1836 = vmatpush3.bf16.msra.mxu0 %v1923_v11 }
 0x598   :  { %1847 = vmatprep.subr.bf16.mxu0 %v2086_v0 }
 0x650   :  { %v812_v61 = vpop.f32.mrf.mxu1 }
 0x651   :  { %v818_v62 = vmul.f32 0.25, %v812_v61  ;;  %v860_v63 = vpop.f32.mrf.mxu0 }
 0x652   :  { %v866_v1 = vmul.f32 0.25, %v860_v63  ;;  %v1817_v2 = vpop.f32.mrf.mxu1 }
 0x653   :  { %819 = vst.msk [vmem:[#allocation2] sm:$0xf] %vm352_vm6, %v818_v62  ;;  %v1823_v3 = vpop.f32.mrf.mxu0  ;;  %v1925_v2 = vld [vmem:[%s2468_s16 + $0x20] sm:$0xff]  }
 0x654   :  { %867 = vst.msk [vmem:[#allocation2 + $0x4] sm:$0xf] %vm352_vm6, %v866_v1  ;;  %v815_v4 = vpop.f32.mrf.mxu1  ;;  %v1924_v1 = vld [vmem:[%s2468_s16 + $0x28] sm:$0xff]  }
 0x655   :  { %v863_v5 = vpop.f32.mrf.mxu0 }
 0x656   :  { %v1818_v6 = vpop.f32.mrf.mxu1 }
 0x657   :  { %v1824_v7 = vpop.f32.mrf.mxu0 }
 0x65b   :  { %v868_v8 = vld [vmem:[#allocation2] sm:$0xff] }
 0x65c   :  { %v873_v9 = vpack.c.bf16 %v868_v8, %v868_v8  ;;  %v1928_v8 = vld [vmem:[%s2468_s16 + $0x8] sm:$0xff]  }
 0x65e   :  { %1830 = vmatmul.mubr.msk.bf16.vlgmr.msra.gmra.mxu1 %vm149_vm1, %v873_v9  ;;  %v1929_v9 = vld [vmem:[%s2468_s16] sm:$0xff]  }
 0x65f   :  { %1843 = vmatprep.mubr.msk.bf16.mxu1 %vm2087_vm0, %v2086_v0 }
 0x71e   :  { %v930_v13 = vpop.f32.mrf.mxu1 }
 0x71f   :  { %v931_v14 = vadd.f32 %v1656_v12, %v930_v13 }
 0x720   :  { %v1831_v15 = vpop.f32.mrf.mxu1 }
 0x721   :  { %v937_v16 = vmin.f32 %v931_v14, 0.0  ;;  %vm936_vm9 = vcmp.gt.f32.partialorder %v931_v14, 0.0 }
 0x722   :  { %v933_v17 = vpop.f32.mrf.mxu1 }
 0x723   :  { %v938_v18 = vmul.f32 1.442695, %v937_v16  ;;  %v1237_v17 = vld [vmem:[#allocation3 + $0x10] sm:$0xff] }
 0x724   :  { %v1832_v19 = vpop.f32.mrf.mxu1 }
 0x725   :  { %1954 = vpow2.f32 %v938_v18 }
 0x732   :  { %v1955_v20 = vpop.eup %1954 }
 0x733   :  { %v1660_v21 = vadd.f32 -1.0, %v1955_v20 }
 0x735   :  { %v941_v22 = vsel %vm936_vm9, %v931_v14, %v1660_v21  ;;  %v1236_v21 = vld [vmem:[#allocation3 + $0x8] sm:$0xff] }
 0x736   :  { %v946_v23 = vpack.c.bf16 %v941_v22, %v941_v22  ;;  %v1242_v22 = vpop.permute.xlu0 %1241 }
 0x738   :  { %1838 = vmatmul.mubr.msk.bf16.vlgmr.msra.gmra.mxu0 %vm149_vm1, %v946_v23 }
 0x739   :  { %1849 = vmatprep.mubr.msk.bf16.mxu0 %vm2087_vm0, %v2086_v0 }
 0x7f8   :  { %v1003_v25 = vpop.f32.mrf.mxu0 }
 0x7f9   :  { %v1004_v26 = vadd.f32 %v1661_v24, %v1003_v25 }
 0x7fa   :  { %v1839_v27 = vpop.f32.mrf.mxu0 }
 0x7fb   :  { %v1010_v28 = vmin.f32 %v1004_v26, 0.0  ;;  %vm1009_vm10 = vcmp.gt.f32.partialorder %v1004_v26, 0.0 }
 0x7fc   :  { %v1006_v29 = vpop.f32.mrf.mxu0 }
 0x7fd   :  { %v1011_v30 = vmul.f32 1.442695, %v1010_v28 }
 0x7fe   :  { %v1840_v31 = vpop.f32.mrf.mxu0 }
 0x7ff   :  { %1956 = vpow2.f32 %v1011_v30 }
 0x80c   :  { %v1957_v32 = vpop.eup %1956 }
 0x80d   :  { %v1665_v33 = vadd.f32 -1.0, %v1957_v32 }
 0x80f   :  { %v1014_v34 = vsel %vm1009_vm10, %v1004_v26, %v1665_v33 }
 0x810   :  { %v1015_v35 = vsel %vm149_vm1, %v1014_v34, 0.0 }
 0x811   :  { %v1016_v36 = vrot.slane %v1015_v35, 4 }
 0x813   :  { %v1017_v37 = vadd.f32 %v1016_v36, %v1015_v35  ;;  %v1931_v35 = vld [vmem:[%s2470_s18] sm:$0xff]  }
 0x814   :  { %v1670_v36 = vld [vmem:[%s2469_s17] ss:$0 sm:$0xff] }
 0x815   :  { %v1018_v38 = vrot.slane %v1017_v37, 2 }
 0x817   :  { %v1019_v39 = vadd.f32 %v1018_v38, %v1017_v37 }
 0x819   :  { %v1020_v40 = vrot.slane %v1019_v39, 1 }
 0x81b   :  { %v1021_v41 = vadd.f32 %v1020_v40, %v1019_v39 }
 0x81d   :  { %v1022_v42 = vmul.f32 0.125, %v1021_v41 }
 0x81f   :  { %v1023_v43 = vsub.f32 %v1014_v34, %v1022_v42  ;;  %v1930_v34 = vld [vmem:[%s2470_s18 + $0x8] sm:$0xff]  }
 0x821   :  { %v1024_v44 = vmul.f32 %v1023_v43, %v1023_v43 }
 0x823   :  { %v1025_v45 = vsel %vm149_vm1, %v1024_v44, 0.0 }
 0x824   :  { %v1026_v46 = vrot.slane %v1025_v45, 4 }
 0x826   :  { %v1027_v47 = vadd.f32 %v1026_v46, %v1025_v45 }
 0x828   :  { %v1028_v48 = vrot.slane %v1027_v47, 2 }
 0x82a   :  { %v1029_v49 = vadd.f32 %v1028_v48, %v1027_v47 }
 0x82c   :  { %v1030_v50 = vrot.slane %v1029_v49, 1 }
 0x82e   :  { %v1031_v51 = vadd.f32 %v1030_v50, %v1029_v49 }
 0x830   :  { %v1032_v52 = vmul.f32 0.125, %v1031_v51 }
 0x832   :  { %v1033_v53 = vadd.f32 1e-05, %v1032_v52 }
 0x834   :  { %1958 = vrsqrt.f32 %v1033_v53 }
 0x841   :  { %v1959_v56 = vpop.eup %1958 }
 0x842   :  { %v1035_v57 = vmul.f32 %v1959_v56, %v1023_v43 }
 0x844   :  { %1036 = vst.msk [vmem:[#allocation2] sm:$0xff] %vm149_vm1, %v1035_v57 }
 0x84b   :  { %v1037_v58 = vld [vmem:[#allocation2] sm:$0xf]  ;;  %v1136_v59 = vld [vmem:[#allocation2 + $0x4] sm:$0xf] }
 0x84c   :  { %v1038_v60 = vpack.c.bf16 %v1037_v58, %v1037_v58  ;;  %v1137_v62 = vpack.c.bf16 %v1136_v59, %v1136_v59 }
 0x84e   :  { %v1040_v61 = vsel %vm306_vm4, %v1038_v60, 0  ;;  %v1139_v63 = vsel %vm306_vm4, %v1137_v62, 0  ;;  %vm1314_vm4 = vcmask 785408  }
 0x84f   :  { %1842 = vmatpush3.bf16.msra.mxu1 %v1040_v61  ;;  %1848 = vmatpush3.bf16.msra.mxu0 %v1040_v61 }
 0x850   :  { %1853 = vmatprep.subr.bf16.mxu1 %v2086_v0  ;;  %1859 = vmatprep.subr.bf16.mxu0 %v2086_v0 }
 0x852   :  { %1850 = vmatmul.mubr.msk.bf16.vlgmr.msra.gmra.mxu0 %vm302_vm5, %v2255_v54  ;;  %1844 = vmatmul.mubr.msk.bf16.vlgmr.msra.gmra.mxu1 %vm302_vm5, %v2260_v55 }
 0x853   :  { %1854 = vmatpush3.bf16.msra.mxu1 %v1139_v63  ;;  %1860 = vmatpush3.bf16.msra.mxu0 %v1139_v63  ;;  %v1932_v63 = vld [vmem:[%s2472_s20 + $0x8] sm:$0xff]  }
 0x854   :  { %1861 = vmatprep.mubr.msk.bf16.mxu0 %vm2087_vm0, %v2086_v0  ;;  %1855 = vmatprep.mubr.msk.bf16.mxu1 %vm2087_vm0, %v2086_v0  ;;  %v1926_v0 = vld [vmem:[%s2468_s16 + $0x18] sm:$0xff]   ;;  %vm1250_vm0 = vcmask 785920  }
 0x855   :  { %1865 = vmatprep.subr.bf16.mxu1 %v1924_v1  ;;  %1881 = vmatprep.subr.bf16.mxu0 %v1930_v34 }
 0x85a   :  { %1862 = vmatmul.mubr.msk.bf16.vlgmr.msra.gmra.mxu0 %vm302_vm5, %v2255_v54  ;;  %1856 = vmatmul.mubr.msk.bf16.vlgmr.msra.gmra.mxu1 %vm302_vm5, %v2260_v55  ;;  %v1927_v55 = vld [vmem:[%s2468_s16 + $0x10] sm:$0xff]  }
 0x85b   :  { %1866 = vmatpush3.bf16.msra.mxu1 %v1924_v1  ;;  %1882 = vmatpush3.bf16.msra.mxu0 %v1930_v34  ;;  %v1933_v1 = vld [vmem:[%s2472_s20] sm:$0xff]  }
 0x85c   :  { %1867 = vmatprep.subr.bf16.mxu1 %v1925_v2  ;;  %1883 = vmatprep.subr.bf16.mxu0 %v1931_v35 }
 0x85f   :  { %1868 = vmatpush3.bf16.msra.mxu1 %v1925_v2  ;;  %1884 = vmatpush3.bf16.msra.mxu0 %v1931_v35  ;;  %v1682_v2 = vld [vmem:[%s2471_s19] ss:$0 sm:$0xff] }
 0x860   :  { %1869 = vmatprep.subr.bf16.mxu1 %v1926_v0  ;;  %1889 = vmatprep.subr.bf16.mxu0 %v1932_v63 }
 0x863   :  { %1870 = vmatpush3.bf16.msra.mxu1 %v1926_v0 }
 0x864   :  { %1871 = vmatprep.subr.bf16.mxu1 %v1927_v55 }
 0x867   :  { %1872 = vmatpush3.bf16.msra.mxu1 %v1927_v55 }
 0x868   :  { %1873 = vmatprep.subr.bf16.mxu1 %v1928_v8 }
 0x86b   :  { %1874 = vmatpush3.bf16.msra.mxu1 %v1928_v8 }
 0x86c   :  { %1875 = vmatprep.subr.bf16.mxu1 %v1929_v9 }
 0x86f   :  { %1876 = vmatpush3.bf16.msra.mxu1 %v1929_v9 }
 0x912   :  { %v1119_v54 = vpop.f32.mrf.mxu0  ;;  %v1076_v3 = vpop.f32.mrf.mxu1 }
 0x913   :  { %1128 = vrot.lane.b32.xlu0 %v1119_v54, %s2088_s28  ;;  %1083 = vst.msk [vmem:[#allocation4] sm:$0xff] %vm149_vm1, %v1076_v3 }
 0x914   :  { %v1851_v4 = vpop.f32.mrf.mxu0  ;;  %v1845_v5 = vpop.f32.mrf.mxu1 }
 0x916   :  { %v1122_v6 = vpop.f32.mrf.mxu0  ;;  %v1079_v7 = vpop.f32.mrf.mxu1 }
 0x917   :  { %1130 = vrot.lane.b32.xlu1 %v1122_v6, %s2088_s28  ;;  %1084 = vst.msk [vmem:[#allocation4 + $0x8] sm:$0xf] %vm352_vm6, %v1079_v7 }
 0x918   :  { %v1852_v10 = vpop.f32.mrf.mxu0  ;;  %v1846_v11 = vpop.f32.mrf.mxu1 }
 0x91a   :  { %v1218_v12 = vpop.f32.mrf.mxu0  ;;  %v1175_v13 = vpop.f32.mrf.mxu1 }
 0x91b   :  { %1227 = vrot.lane.b32.xlu0 %v1218_v12, %s2088_s28  ;;  %1182 = vst.msk [vmem:[#allocation4 + $0xc] sm:$0xff] %vm149_vm1, %v1175_v13 }
 0x91c   :  { %v1863_v14 = vpop.f32.mrf.mxu0  ;;  %v1857_v15 = vpop.f32.mrf.mxu1 }
 0x91e   :  { %v1221_v16 = vpop.f32.mrf.mxu0  ;;  %v1178_v18 = vpop.f32.mrf.mxu1 }
 0x91f   :  { %1245 = vrot.lane.b32.xlu0 %v1237_v17, %s2089_s11  ;;  %1229 = vrot.lane.b32.xlu1 %v1221_v16, %s2088_s28  ;;  %1183 = vst.msk [vmem:[#allocation4 + $0x14] sm:$0xf] %vm352_vm6, %v1178_v18 }
 0x920   :  { %v1864_v19 = vpop.f32.mrf.mxu0  ;;  %v1858_v20 = vpop.f32.mrf.mxu1 }
 0x923   :  { %1243 = vrot.lane.b32.xlu1 %v1236_v21, %s2089_s11 }
 0x985   :  { %v1129_v23 = vpop.permute.xlu0 %1128 }
 0x986   :  { %1134 = vst.msk [vmem:[#allocation4] sm:$0xff] %vm411_vm7, %v1129_v23 }
 0x987   :  { %1251 = vst.msk [vmem:[#allocation4] sm:$0xff] %vm1250_vm0, %v1242_v22 }
 0x989   :  { %v1131_v24 = vpop.permute.xlu1 %1130 }
 0x98a   :  { %1135 = vst.msk [vmem:[#allocation4 + $0x8] sm:$0xf] %vm413_vm8, %v1131_v24 }
 0x98d   :  { %v1228_v25 = vpop.permute.xlu0 %1227 }
 0x98e   :  { %1233 = vst.msk [vmem:[#allocation4 + $0xc] sm:$0xff] %vm411_vm7, %v1228_v25  ;;  %v1254_v30 = vld [vmem:[#allocation4] sm:$0xff] }
 0x991   :  { %v1246_v26 = vpop.permute.xlu0 %1245  ;;  %v1230_v27 = vpop.permute.xlu1 %1229 }
 0x992   :  { %1234 = vst.msk [vmem:[#allocation4 + $0x14] sm:$0xf] %vm413_vm8, %v1230_v27 }
 0x993   :  { %1253 = vst.msk [vmem:[#allocation4 + $0x10] sm:$0xff] %vm1250_vm0, %v1246_v26 }
 0x995   :  { %v1244_v28 = vpop.permute.xlu1 %1243 }
 0x996   :  { %1252 = vst.msk [vmem:[#allocation4 + $0x8] sm:$0xff] %vm1250_vm0, %v1244_v28 }
 0x99a   :  { %v1256_v29 = vld [vmem:[#allocation4 + $0x10] sm:$0xff] }
 0x99b   :  { %v1270_v33 = vpack.c.bf16 %v1256_v29, %v1256_v29 }
 0x99d   :  { %v1255_v31 = vld [vmem:[#allocation4 + $0x8] sm:$0xff] }
 0x99e   :  { %v1269_v32 = vpack.c.bf16 %v1255_v31, %v1254_v30 }
 0x9a0   :  { %1877 = vmatprep.mubr.msk.bf16.mxu1 %vm1314_vm4, %v1269_v32 }
 0x9a1   :  { %1878 = vmatmul.mubr.msk.bf16.vlgmr.msra.gmra.mxu1 %vm1314_vm4, %v1270_v33 }
 0xa61   :  { %v1879_v37 = vpop.f32.mrf.mxu1 }
 0xa62   :  { %v1364_v38 = vadd.f32 %v1879_v37, %v1670_v36 }
 0xa63   :  { %v1355_v39 = vpop.f32.mrf.mxu1 }
 0xa64   :  { %v1374_v40 = vmin.f32 %v1364_v38, 0.0  ;;  %v1356_v41 = vadd.f32 %v1670_v36, %v1355_v39  ;;  %vm1371_vm5 = vcmp.gt.f32.partialorder %v1364_v38, 0.0 }
 0xa65   :  { %v1880_v42 = vpop.f32.mrf.mxu1 }
 0xa66   :  { %v1379_v43 = vmul.f32 1.442695, %v1374_v40  ;;  %v1372_v44 = vmin.f32 %v1356_v41, 0.0  ;;  %vm1369_vm6 = vcmp.gt.f32.partialorder %v1356_v41, 0.0 }
 0xa67   :  { %v1358_v45 = vpop.f32.mrf.mxu1 }
 0xa68   :  { %v1375_v46 = vmul.f32 1.442695, %v1372_v44  ;;  %v1359_v47 = vadd.f32 %v1670_v36, %v1358_v45  ;;  %1960 = vpow2.f32 %v1379_v43 }
 0xa6a   :  { %1962 = vpow2.f32 %v1375_v46  ;;  %v1373_v48 = vmin.f32 %v1359_v47, 0.0  ;;  %vm1370_vm7 = vcmp.gt.f32.partialorder %v1359_v47, 0.0 }
 0xa6c   :  { %v1377_v49 = vmul.f32 1.442695, %v1373_v48 }
 0xa6e   :  { %1964 = vpow2.f32 %v1377_v49 }
 0xa75   :  { %v1961_v50 = vpop.eup %1960 }
 0xa76   :  { %v1681_v52 = vadd.f32 -1.0, %v1961_v50 }
 0xa77   :  { %v1963_v51 = vpop.eup %1962 }
 0xa78   :  { %v1679_v53 = vadd.f32 -1.0, %v1963_v51  ;;  %v1386_v58 = vsel %vm1371_vm5, %v1364_v38, %v1681_v52 }
 0xa79   :  { %v1392_v62 = vpack.c.bf16 %v1386_v58, %v1386_v58 }
 0xa7a   :  { %v1384_v59 = vsel %vm1369_vm6, %v1356_v41, %v1679_v53 }
 0xa7b   :  { %v1965_v56 = vpop.eup %1964 }
 0xa7c   :  { %v1680_v57 = vadd.f32 -1.0, %v1965_v56 }
 0xa7e   :  { %v1385_v60 = vsel %vm1370_vm7, %v1359_v47, %v1680_v57 }
 0xa7f   :  { %v1391_v61 = vpack.c.bf16 %v1385_v60, %v1384_v59 }
 0xa81   :  { %1885 = vmatprep.mubr.msk.bf16.mxu0 %vm149_vm1, %v1391_v61  ;;  %v1690_v61 = vld [vmem:[%s2473_s21] ss:$0 sm:$0xff] }
 0xa82   :  { %1886 = vmatmul.mubr.msk.bf16.vlgmr.msra.gmra.mxu0 %vm149_vm1, %v1392_v62 }
 0xa83   :  { %1890 = vmatpush3.bf16.msra.mxu0 %v1932_v63 }
 0xa84   :  { %1891 = vmatprep.subr.bf16.mxu0 %v1933_v1 }
 0xa87   :  { %1892 = vmatpush3.bf16.msra.mxu0 %v1933_v1 }
 0xb42   :  { %v1887_v0 = vpop.f32.mrf.mxu0 }
 0xb43   :  { %v1461_v54 = vadd.f32 %v1887_v0, %v1682_v2 }
 0xb44   :  { %v1452_v3 = vpop.f32.mrf.mxu0 }
 0xb45   :  { %v1471_v55 = vmin.f32 %v1461_v54, 0.0  ;;  %v1453_v4 = vadd.f32 %v1682_v2, %v1452_v3  ;;  %vm1468_vm11 = vcmp.gt.f32.partialorder %v1461_v54, 0.0 }
 0xb46   :  { %v1888_v5 = vpop.f32.mrf.mxu0 }
 0xb47   :  { %v1476_v6 = vmul.f32 1.442695, %v1471_v55  ;;  %v1469_v7 = vmin.f32 %v1453_v4, 0.0  ;;  %vm1466_vm8 = vcmp.gt.f32.partialorder %v1453_v4, 0.0 }
 0xb48   :  { %v1455_v8 = vpop.f32.mrf.mxu0 }
 0xb49   :  { %v1472_v9 = vmul.f32 1.442695, %v1469_v7  ;;  %v1456_v10 = vadd.f32 %v1682_v2, %v1455_v8  ;;  %1966 = vpow2.f32 %v1476_v6 }
 0xb4b   :  { %1968 = vpow2.f32 %v1472_v9  ;;  %v1470_v11 = vmin.f32 %v1456_v10, 0.0  ;;  %vm1467_vm12 = vcmp.gt.f32.partialorder %v1456_v10, 0.0 }
 0xb4d   :  { %v1474_v12 = vmul.f32 1.442695, %v1470_v11 }
 0xb4f   :  { %1970 = vpow2.f32 %v1474_v12 }
 0xb56   :  { %v1967_v13 = vpop.eup %1966 }
 0xb57   :  { %v1689_v16 = vadd.f32 -1.0, %v1967_v13 }
 0xb58   :  { %v1969_v14 = vpop.eup %1968 }
 0xb59   :  { %v1687_v15 = vadd.f32 -1.0, %v1969_v14  ;;  %v1483_v20 = vsel %vm1468_vm11, %v1461_v54, %v1689_v16 }
 0xb5a   :  { %v1487_v25 = vsel %vm149_vm1, %v1483_v20, 0.0 }
 0xb5b   :  { %v1481_v18 = vsel %vm1466_vm8, %v1453_v4, %v1687_v15 }
 0xb5c   :  { %v1971_v17 = vpop.eup %1970  ;;  %v1484_v22 = vsel %vm149_vm1, %v1481_v18, 0.0 }
 0xb5d   :  { %v1688_v19 = vadd.f32 -1.0, %v1971_v17 }
 0xb5f   :  { %v1482_v21 = vsel %vm1467_vm12, %v1456_v10, %v1688_v19 }
 0xb60   :  { %v1485_v23 = vsel %vm149_vm1, %v1482_v21, 0.0 }
 0xb61   :  { %v1486_v24 = vadd.f32 %v1485_v23, %v1484_v22 }
 0xb63   :  { %v1488_v26 = vadd.f32 %v1487_v25, %v1486_v24 }
 0xb65   :  { %v1489_v27 = vrot.slane %v1488_v26, 4 }
 0xb67   :  { %v1490_v28 = vadd.f32 %v1489_v27, %v1488_v26 }
 0xb69   :  { %v1491_v29 = vrot.slane %v1490_v28, 2 }
 0xb6b   :  { %v1492_v30 = vadd.f32 %v1491_v29, %v1490_v28 }
 0xb6d   :  { %v1493_v31 = vrot.slane %v1492_v30, 1 }
 0xb6f   :  { %v1494_v32 = vadd.f32 %v1493_v31, %v1492_v30 }
 0xb71   :  { %v1495_v33 = vmul.f32 0.041666668, %v1494_v32 }
 0xb73   :  { %v1496_v34 = vsub.f32 %v1481_v18, %v1495_v33  ;;  %v1497_v35 = vsub.f32 %v1482_v21, %v1495_v33  ;;  %v1498_v36 = vsub.f32 %v1483_v20, %v1495_v33 }
 0xb75   :  { %v1499_v37 = vmul.f32 %v1496_v34, %v1496_v34  ;;  %v1500_v38 = vmul.f32 %v1497_v35, %v1497_v35  ;;  %v1501_v39 = vmul.f32 %v1498_v36, %v1498_v36 }
 0xb77   :  { %v1502_v40 = vsel %vm149_vm1, %v1499_v37, 0.0  ;;  %v1503_v41 = vsel %vm149_vm1, %v1500_v38, 0.0  ;;  %v1505_v43 = vsel %vm149_vm1, %v1501_v39, 0.0 }
 0xb78   :  { %v1504_v42 = vadd.f32 %v1503_v41, %v1502_v40 }
 0xb7a   :  { %v1506_v44 = vadd.f32 %v1505_v43, %v1504_v42 }
 0xb7c   :  { %v1507_v45 = vrot.slane %v1506_v44, 4 }
 0xb7e   :  { %v1508_v46 = vadd.f32 %v1507_v45, %v1506_v44 }
 0xb80   :  { %v1509_v47 = vrot.slane %v1508_v46, 2 }
 0xb82   :  { %v1510_v48 = vadd.f32 %v1509_v47, %v1508_v46 }
 0xb84   :  { %v1511_v49 = vrot.slane %v1510_v48, 1 }
 0xb86   :  { %v1512_v50 = vadd.f32 %v1511_v49, %v1510_v48 }
 0xb88   :  { %v1513_v51 = vmul.f32 0.041666668, %v1512_v50 }
 0xb8a   :  { %v1514_v52 = vadd.f32 1e-05, %v1513_v51 }
 0xb8c   :  { %1972 = vrsqrt.f32 %v1514_v52 }
 0xb99   :  { %v1973_v53 = vpop.eup %1972 }
 0xb9a   :  { %v1517_v56 = vmul.f32 %v1973_v53, %v1497_v35  ;;  %v1516_v57 = vmul.f32 %v1973_v53, %v1496_v34  ;;  %v1518_v58 = vmul.f32 %v1973_v53, %v1498_v36 }
 0xb9c   :  { %v1523_v59 = vpack.c.bf16 %v1517_v56, %v1516_v57  ;;  %v1524_v60 = vpack.c.bf16 %v1518_v58, %v1518_v58 }
 0xb9e   :  { %1893 = vmatprep.mubr.msk.bf16.mxu0 %vm149_vm1, %v1523_v59 }
 0xb9f   :  { %1894 = vmatmul.mubr.msk.bf16.vlgmr.msra.gmra.mxu0 %vm149_vm1, %v1524_v60 }
 0xc5f   :  { %v1895_v62 = vpop.f32.mrf.mxu0 }
 0xc60   :  { %v1593_v63 = vadd.f32 %v1895_v62, %v1690_v61 }
 0xc61   :  { %v1584_v1 = vpop.f32.mrf.mxu0 }
 0xc62   :  { %1600 = vst [vmem:[#allocation13 + $0x10] sm:$0xff] %v1593_v63  ;;  %v1585_v2 = vadd.f32 %v1690_v61, %v1584_v1 }
 0xc63   :  { %v1896_v0 = vpop.f32.mrf.mxu0 }
 0xc64   :  { %1598 = vst [vmem:[#allocation13] sm:$0xff] %v1585_v2 }
 0xc65   :  { %v1587_v54 = vpop.f32.mrf.mxu0 }
 0xc66   :  { %v1588_v3 = vadd.f32 %v1690_v61, %v1587_v54 }
 0xc68   :  { %1599 = vst [vmem:[#allocation13 + $0x8] sm:$0xff] %v1588_v3 }
 0xc69   :  { %2065 = shalt.err (!%p2062_p10)
}
 0xc6a   :  { %s2091_s21 = smov 128   ;;  %s2092_s15 = smov 8  }
 0xc6b   :  { %1612 = dma.vmem_to_hbm [thread:$0]  %s1607_s14, 384, %s2474_s22, [#allocation7], %s2091_s21, %s2091_s21, %s2092_s15  }
 0xc6c   :  { %2080 = dma.done.wait [#allocation7], 384  }
 0xc6d   :  { %2081 = vsyncadd [#allocation7], 4294966912 }
 0xc6e   :  { %1616 = vsyncpa [#allocation6], 1 }
 0xc6f   :  { %1617 = vsyncpa [#allocation9], 1 }
 0xc70   :  { %1618 = vsyncpa [#allocation12], 1 }
 0xc71   :  { %1619 = vsyncpa [#allocation7], 1 }

</bundles_post_ra>
